<compile_context>
chip_gen: v7x
topology: tpu7x:2x2x1
jax: 0.10.0
libtpu: 0.0.40
codegen_flags: <defaults>
</compile_context>

<pallas_src>
import functools

import jax
import jax.numpy as jnp
from jax.experimental import pallas as pl
from jax.experimental.pallas import tpu as pltpu


def _round_up(x, m):
    return (x + m - 1) // m * m


def rnn_seq_kernel(x_ref, h0_ref, wx_ref, wh_ref, b_ref,
                   logp_ref, hfin_ref, h_scr, *, seq_len, hp):
    # x_ref   : VMEM (Tt, Bp, E)  f32  pre-gathered word vectors for this time chunk
    # h0_ref  : VMEM (Bp, HP)     f32  initial hidden (resident; read once at g == 0)
    # wx_ref  : VMEM (E,  NP)     f32  word-vec -> [hidden | logits] fused weight (resident)
    # wh_ref  : VMEM (HP, NP)     f32  hidden   -> [hidden | logits] fused weight (resident)
    # b_ref   : VMEM (1,  NP)     f32  fused bias (padded logit lanes = -1e30)
    # logp_ref: VMEM (Tt, Bp, OP)      per-step log-probs (lane-dense, unmasked stores)
    # hfin_ref: VMEM (Bp, HP)          final hidden (constant index map, written once)
    # h_scr   : VMEM scratch (Bp, HP)  hidden carry across grid steps
    g = pl.program_id(0)
    t_chunk = x_ref.shape[0]

    # Initialize the recurrent carry once; it stays resident in VMEM across the grid.
    @pl.when(g == 0)
    def _():
        h_scr[...] = h0_ref[...]

    wx = wx_ref[...]
    wh = wh_ref[...]
    b = b_ref[...]

    def step(t, h):
        # Two small MXU dots instead of packing [wv | h] into one slab.
        z = (jnp.dot(x_ref[t], wx, preferred_element_type=jnp.float32)
             + jnp.dot(h, wh, preferred_element_type=jnp.float32)
             + b)                                    # (Bp, NP)
        new_h = z[:, :hp]                            # vreg-aligned slice (lanes 0:HP)
        logits = z[:, hp:]                           # vreg-aligned slice (lanes HP:NP)

        # LogSoftmax(dim=1); padded logit lanes carry bias -1e30 -> exp underflows to 0.
        m = jnp.max(logits, axis=1, keepdims=True)
        shifted = logits - m
        lse = jnp.log(jnp.sum(jnp.exp(shifted), axis=1, keepdims=True))
        logp_ref[t] = shifted - lse                  # full-vreg unmasked store

        if seq_len is not None:                      # trace-time: only when T was padded
            valid = (g * t_chunk + t) < seq_len
            new_h = jnp.where(valid, new_h, h)       # freeze carry on padded timesteps
        return new_h

    h_final = jax.lax.fori_loop(0, t_chunk, step, h_scr[...], unroll=True)
    h_scr[...] = h_final

    @pl.when(g == pl.num_programs(0) - 1)
    def _():
        hfin_ref[...] = h_final


def rnn_forward_sequence(token_ids, h0, emb, w_i2h, b_i2h, w_i2o, b_i2o, *, t_chunk=16):
    """Run the RNN over a whole sequence in a single pallas_call.

    token_ids : (T, B) int32   (ids must be in [0, word_count))
    h0        : (B, H) f32
    emb       : (W, E) f32                       nn.Embedding weight
    w_i2h     : (H, E+H) f32, b_i2h (H,) f32     nn.Linear i2h (PyTorch layout)
    w_i2o     : (O, E+H) f32, b_i2o (O,) f32     nn.Linear i2o (PyTorch layout)

    Returns (log_probs (T, B, O), final_hidden (B, H)); each step matches RNN.forward.
    """
    T, B = token_ids.shape
    E = emb.shape[1]
    H = w_i2h.shape[0]
    O = w_i2o.shape[0]

    Bp = _round_up(max(B, 8), 8)                     # fill f32 sublanes
    HP = max(_round_up(H, 128), 128)                 # lane-dense hidden slab
    OP = max(_round_up(O, 128), 128)                 # lane-dense logit slab
    NP = HP + OP

    Tt = min(t_chunk, T)                             # timesteps per grid iteration
    T_pad = _round_up(T, Tt)

    f32 = jnp.float32

    # Hoisted embedding gather: stream pre-gathered word vectors per time chunk.
    wv = emb.astype(f32)[token_ids]                                  # (T, B, E)
    x = jnp.zeros((T_pad, Bp, E), f32).at[:T, :B, :].set(wv)

    h0_p = jnp.zeros((Bp, HP), f32).at[:B, :H].set(h0.astype(f32))

    # Split-contraction / fused-output weights, lane-dense padded:
    #   output columns [0:H]     -> i2h   (rest of hidden slab zero)
    #   output columns [HP:HP+O] -> i2o   (padded logit lanes get bias -1e30)
    wx = jnp.zeros((E, NP), f32)
    wx = wx.at[:, :H].set(w_i2h[:, :E].T.astype(f32))
    wx = wx.at[:, HP:HP + O].set(w_i2o[:, :E].T.astype(f32))

    wh = jnp.zeros((HP, NP), f32)
    wh = wh.at[:H, :H].set(w_i2h[:, E:].T.astype(f32))
    wh = wh.at[:H, HP:HP + O].set(w_i2o[:, E:].T.astype(f32))

    b = jnp.zeros((1, NP), f32)
    b = b.at[0, :H].set(b_i2h.astype(f32))
    b = b.at[0, HP:HP + O].set(b_i2o.astype(f32))
    b = b.at[0, HP + O:].set(-1e30)                  # mask padded logit lanes in softmax

    kernel = functools.partial(rnn_seq_kernel,
                               seq_len=(T if T_pad != T else None), hp=HP)

    grid_spec = pltpu.PrefetchScalarGridSpec(
        num_scalar_prefetch=0,
        grid=(T_pad // Tt,),
        in_specs=[
            pl.BlockSpec((Tt, Bp, E), lambda g: (g, 0, 0)),   # streamed word vectors
            pl.BlockSpec((Bp, HP), lambda g: (0, 0)),         # h0  (resident)
            pl.BlockSpec((E, NP), lambda g: (0, 0)),          # Wx  (resident)
            pl.BlockSpec((HP, NP), lambda g: (0, 0)),         # Wh  (resident)
            pl.BlockSpec((1, NP), lambda g: (0, 0)),          # b   (resident)
        ],
        out_specs=[
            pl.BlockSpec((Tt, Bp, OP), lambda g: (g, 0, 0)),  # per-step log-probs
            pl.BlockSpec((Bp, HP), lambda g: (0, 0)),         # final hidden (resident)
        ],
        scratch_shapes=[pltpu.VMEM((Bp, HP), f32)],           # hidden carry
    )

    logp_pad, hfin_pad = pl.pallas_call(
        kernel,
        out_shape=(jax.ShapeDtypeStruct((T_pad, Bp, OP), f32),
                   jax.ShapeDtypeStruct((Bp, HP), f32)),
        grid_spec=grid_spec,
        compiler_params=pltpu.CompilerParams(
            dimension_semantics=("arbitrary",)),              # time axis carries the RNN
    )(x, h0_p, wx, wh, b)

    return logp_pad[:T, :B, :O], hfin_pad[:B, :H]


def rnn_forward(input_ids, hidden, emb, w_i2h, b_i2h, w_i2o, b_i2o):
    """Single RNN.forward step (module-equivalent interface): input_ids (B,), hidden (B,H)."""
    logp, new_h = rnn_forward_sequence(input_ids.reshape(1, -1), hidden,
                                       emb, w_i2h, b_i2h, w_i2o, b_i2o)
    return logp[0], new_h


def reference_forward_sequence(token_ids, h0, emb, w_i2h, b_i2h, w_i2o, b_i2o):
    h = h0
    outs = []
    for t in range(token_ids.shape[0]):
        wvec = emb[token_ids[t]]                             # (B, E)
        combined = jnp.concatenate([wvec, h], axis=1)        # (B, E+H)
        h = combined @ w_i2h.T + b_i2h
        logits = combined @ w_i2o.T + b_i2o
        outs.append(jax.nn.log_softmax(logits, axis=1))
    return jnp.stack(outs, axis=0), h


if __name__ == "__main__":
    # small shapes consistent with the module
    word_count = 50
    embedding_size = 64
    hidden_size = 32
    output_size = 8
    batch = 2
    seq_len = 8

    key = jax.random.PRNGKey(0)
    k_emb, k_wh, k_bh, k_wo, k_bo, k_idx = jax.random.split(key, 6)

    in_feats = embedding_size + hidden_size
    bound = 1.0 / jnp.sqrt(jnp.float32(in_feats))

    # parameters (PyTorch-style layouts)
    emb = jax.random.normal(k_emb, (word_count, embedding_size), jnp.float32)
    w_i2h = jax.random.uniform(k_wh, (hidden_size, in_feats), jnp.float32, -bound, bound)
    b_i2h = jax.random.uniform(k_bh, (hidden_size,), jnp.float32, -bound, bound)
    w_i2o = jax.random.uniform(k_wo, (output_size, in_feats), jnp.float32, -bound, bound)
    b_i2o = jax.random.uniform(k_bo, (output_size,), jnp.float32, -bound, bound)

    token_ids = jax.random.randint(k_idx, (seq_len, batch), 0, word_count, jnp.int32)
    hidden0 = jnp.zeros((batch, hidden_size), jnp.float32)   # initHidden (broadcast to batch)

    # full-sequence run (single pallas_call, chunked time loop inside)
    out_seq, h_final = rnn_forward_sequence(token_ids, hidden0, emb,
                                            w_i2h, b_i2h, w_i2o, b_i2o)
    jax.block_until_ready((out_seq, h_final))

    ref_seq, ref_h = reference_forward_sequence(token_ids, hidden0, emb,
                                                w_i2h, b_i2h, w_i2o, b_i2o)
    assert out_seq.shape == (seq_len, batch, output_size)
    assert h_final.shape == (batch, hidden_size)
    # modest tolerance: f32 MXU pass decomposition may differ slightly between Pallas and XLA
    assert jnp.allclose(out_seq, ref_seq, atol=1e-3, rtol=1e-3)
    assert jnp.allclose(h_final, ref_h, atol=1e-3, rtol=1e-3)

    # single-step interface (exactly the module's forward signature)
    out1, h1 = rnn_forward(token_ids[0], hidden0, emb, w_i2h, b_i2h, w_i2o, b_i2o)
    jax.block_until_ready((out1, h1))
    assert jnp.allclose(out1, ref_seq[0], atol=1e-3, rtol=1e-3)

    print("KERNEL_OK")
</pallas_src>

<mosaic_0001>
module attributes {stable_mosaic.version = 11 : i64} {
  func.func @rnn_seq_kernel(%arg0: i32, %arg1: memref<8x8x64xf32, #tpu.memory_space<vmem>>, %arg2: memref<8x128xf32, #tpu.memory_space<vmem>>, %arg3: memref<64x256xf32, #tpu.memory_space<vmem>>, %arg4: memref<128x256xf32, #tpu.memory_space<vmem>>, %arg5: memref<1x256xf32, #tpu.memory_space<vmem>>, %arg6: memref<8x8x128xf32, #tpu.memory_space<vmem>>, %arg7: memref<8x128xf32, #tpu.memory_space<vmem>>, %arg8: memref<8x128xf32, #tpu.memory_space<vmem>>) attributes {dimension_semantics = [#tpu.dimension_semantics<arbitrary>], iteration_bounds = array<i64: 1>, scalar_prefetch = 0 : i64, scratch_operands = 1 : i64, tpu.core_type = #tpu.core_type<tc>, window_params = [{transform_indices = @transform_0, window_bounds = array<i64: 8, 8, 64>}, {pipeline_mode = #tpu.pipeline_mode<synchronous>, transform_indices = @transform_1, window_bounds = array<i64: 8, 128>}, {pipeline_mode = #tpu.pipeline_mode<synchronous>, transform_indices = @transform_2, window_bounds = array<i64: 64, 256>}, {pipeline_mode = #tpu.pipeline_mode<synchronous>, transform_indices = @transform_3, window_bounds = array<i64: 128, 256>}, {pipeline_mode = #tpu.pipeline_mode<synchronous>, transform_indices = @transform_4, window_bounds = array<i64: 1, 256>}, {transform_indices = @transform_5, window_bounds = array<i64: 8, 8, 128>}, {pipeline_mode = #tpu.pipeline_mode<synchronous>, transform_indices = @transform_6, window_bounds = array<i64: 8, 128>}]} {
    %c0_i32 = arith.constant 0 : i32
    %0 = arith.cmpi eq, %arg0, %c0_i32 : i32
    %1 = arith.extui %0 : i1 to i32
    %c0_i32_0 = arith.constant 0 : i32
    %2 = arith.cmpi ne, %1, %c0_i32_0 : i32
    scf.if %2 {
      %c0_76 = arith.constant 0 : index
      %c0_77 = arith.constant 0 : index
      %203 = vector.load %arg2[%c0_76, %c0_77] : memref<8x128xf32, #tpu.memory_space<vmem>>, vector<8x128xf32>
      %c0_78 = arith.constant 0 : index
      %c0_79 = arith.constant 0 : index
      %204 = vector.load %arg8[%c0_78, %c0_79] : memref<8x128xf32, #tpu.memory_space<vmem>>, vector<8x128xf32>
      tpu.vector_store %arg8[%c0_78, %c0_79], %203 {strides = array<i32>} : memref<8x128xf32, #tpu.memory_space<vmem>>, vector<8x128xf32>,
    } else {
    }
    %c0 = arith.constant 0 : index
    %c0_1 = arith.constant 0 : index
    %3 = vector.load %arg3[%c0, %c0_1] : memref<64x256xf32, #tpu.memory_space<vmem>>, vector<64x256xf32>
    %c0_2 = arith.constant 0 : index
    %c0_3 = arith.constant 0 : index
    %4 = vector.load %arg4[%c0_2, %c0_3] : memref<128x256xf32, #tpu.memory_space<vmem>>, vector<128x256xf32>
    %c0_4 = arith.constant 0 : index
    %c0_5 = arith.constant 0 : index
    %5 = vector.load %arg5[%c0_4, %c0_5] : memref<1x256xf32, #tpu.memory_space<vmem>>, vector<1x256xf32>
    %c0_6 = arith.constant 0 : index
    %c0_7 = arith.constant 0 : index
    %6 = vector.load %arg8[%c0_6, %c0_7] : memref<8x128xf32, #tpu.memory_space<vmem>>, vector<8x128xf32>
    %c0_i32_8 = arith.constant 0 : i32
    %7 = arith.index_cast %c0_i32_8 : i32 to index
    %c0_9 = arith.constant 0 : index
    %c0_10 = arith.constant 0 : index
    %8 = vector.load %arg1[%7, %c0_9, %c0_10] : memref<8x8x64xf32, #tpu.memory_space<vmem>>, vector<1x8x64xf32>
    %9 = vector.shape_cast %8 : vector<1x8x64xf32> to vector<8x64xf32>
    %cst = arith.constant dense<0.000000e+00> : vector<8x256xf32>
    %10 = tpu.matmul %9, %3, %cst {dimension_numbers = #tpu.dot_dimension_numbers<[1], [0], [0], [1], [0, 0, 1, 1], [], []>} : vector<8x64xf32>, vector<64x256xf32>, vector<8x256xf32> -> vector<8x256xf32>
    %cst_11 = arith.constant dense<0.000000e+00> : vector<8x256xf32>
    %11 = tpu.matmul %6, %4, %cst_11 {dimension_numbers = #tpu.dot_dimension_numbers<[1], [0], [0], [1], [0, 0, 1, 1], [], []>} : vector<8x128xf32>, vector<128x256xf32>, vector<8x256xf32> -> vector<8x256xf32>
    %12 = arith.addf %10, %11 : vector<8x256xf32>
    %13 = vector.broadcast %5 : vector<1x256xf32> to vector<8x256xf32>
    %14 = arith.addf %12, %13 : vector<8x256xf32>
    %15 = vector.extract_strided_slice %14 {offsets = [0, 0], sizes = [8, 128], strides = [1, 1]} : vector<8x256xf32> to vector<8x128xf32>
    %16 = vector.extract_strided_slice %14 {offsets = [0, 128], sizes = [8, 128], strides = [1, 1]} : vector<8x256xf32> to vector<8x128xf32>
    %cst_12 = arith.constant dense<0xFF800000> : vector<8xf32>
    %17 = vector.multi_reduction <maximumf>, %16, %cst_12 [1] : vector<8x128xf32> to vector<8xf32>
    %18 = vector.shape_cast %17 : vector<8xf32> to vector<8x1xf32>
    %19 = vector.broadcast %18 : vector<8x1xf32> to vector<8x128xf32>
    %20 = arith.subf %16, %19 : vector<8x128xf32>
    %21 = math.exp %20 : vector<8x128xf32>
    %cst_13 = arith.constant dense<0.000000e+00> : vector<8xf32>
    %22 = vector.multi_reduction <add>, %21, %cst_13 [1] : vector<8x128xf32> to vector<8xf32>
    %23 = vector.shape_cast %22 : vector<8xf32> to vector<8x1xf32>
    %24 = math.log %23 : vector<8x1xf32>
    %25 = vector.broadcast %24 : vector<8x1xf32> to vector<8x128xf32>
    %26 = arith.subf %20, %25 : vector<8x128xf32>
    %27 = arith.index_cast %c0_i32_8 : i32 to index
    %c0_14 = arith.constant 0 : index
    %c0_15 = arith.constant 0 : index
    %28 = vector.load %arg6[%27, %c0_14, %c0_15] : memref<8x8x128xf32, #tpu.memory_space<vmem>>, vector<1x8x128xf32>
    %29 = vector.shape_cast %28 : vector<1x8x128xf32> to vector<8x128xf32>
    %30 = vector.shape_cast %26 : vector<8x128xf32> to vector<1x8x128xf32>
    tpu.vector_store %arg6[%27, %c0_14, %c0_15], %30 {strides = array<i32>} : memref<8x8x128xf32, #tpu.memory_space<vmem>>, vector<1x8x128xf32>,
    %c1_i32 = arith.constant 1 : i32
    %31 = arith.index_cast %c1_i32 : i32 to index
    %c0_16 = arith.constant 0 : index
    %c0_17 = arith.constant 0 : index
    %32 = vector.load %arg1[%31, %c0_16, %c0_17] : memref<8x8x64xf32, #tpu.memory_space<vmem>>, vector<1x8x64xf32>
    %33 = vector.shape_cast %32 : vector<1x8x64xf32> to vector<8x64xf32>
    %cst_18 = arith.constant dense<0.000000e+00> : vector<8x256xf32>
    %34 = tpu.matmul %33, %3, %cst_18 {dimension_numbers = #tpu.dot_dimension_numbers<[1], [0], [0], [1], [0, 0, 1, 1], [], []>} : vector<8x64xf32>, vector<64x256xf32>, vector<8x256xf32> -> vector<8x256xf32>
    %cst_19 = arith.constant dense<0.000000e+00> : vector<8x256xf32>
    %35 = tpu.matmul %15, %4, %cst_19 {dimension_numbers = #tpu.dot_dimension_numbers<[1], [0], [0], [1], [0, 0, 1, 1], [], []>} : vector<8x128xf32>, vector<128x256xf32>, vector<8x256xf32> -> vector<8x256xf32>
    %36 = arith.addf %34, %35 : vector<8x256xf32>
    %37 = vector.broadcast %5 : vector<1x256xf32> to vector<8x256xf32>
    %38 = arith.addf %36, %37 : vector<8x256xf32>
    %39 = vector.extract_strided_slice %38 {offsets = [0, 0], sizes = [8, 128], strides = [1, 1]} : vector<8x256xf32> to vector<8x128xf32>
    %40 = vector.extract_strided_slice %38 {offsets = [0, 128], sizes = [8, 128], strides = [1, 1]} : vector<8x256xf32> to vector<8x128xf32>
    %cst_20 = arith.constant dense<0xFF800000> : vector<8xf32>
    %41 = vector.multi_reduction <maximumf>, %40, %cst_20 [1] : vector<8x128xf32> to vector<8xf32>
    %42 = vector.shape_cast %41 : vector<8xf32> to vector<8x1xf32>
    %43 = vector.broadcast %42 : vector<8x1xf32> to vector<8x128xf32>
    %44 = arith.subf %40, %43 : vector<8x128xf32>
    %45 = math.exp %44 : vector<8x128xf32>
    %cst_21 = arith.constant dense<0.000000e+00> : vector<8xf32>
    %46 = vector.multi_reduction <add>, %45, %cst_21 [1] : vector<8x128xf32> to vector<8xf32>
    %47 = vector.shape_cast %46 : vector<8xf32> to vector<8x1xf32>
    %48 = math.log %47 : vector<8x1xf32>
    %49 = vector.broadcast %48 : vector<8x1xf32> to vector<8x128xf32>
    %50 = arith.subf %44, %49 : vector<8x128xf32>
    %51 = arith.index_cast %c1_i32 : i32 to index
    %c0_22 = arith.constant 0 : index
    %c0_23 = arith.constant 0 : index
    %52 = vector.load %arg6[%51, %c0_22, %c0_23] : memref<8x8x128xf32, #tpu.memory_space<vmem>>, vector<1x8x128xf32>
    %53 = vector.shape_cast %52 : vector<1x8x128xf32> to vector<8x128xf32>
    %54 = vector.shape_cast %50 : vector<8x128xf32> to vector<1x8x128xf32>
    tpu.vector_store %arg6[%51, %c0_22, %c0_23], %54 {strides = array<i32>} : memref<8x8x128xf32, #tpu.memory_space<vmem>>, vector<1x8x128xf32>,
    %c2_i32 = arith.constant 2 : i32
    %55 = arith.index_cast %c2_i32 : i32 to index
    %c0_24 = arith.constant 0 : index
    %c0_25 = arith.constant 0 : index
    %56 = vector.load %arg1[%55, %c0_24, %c0_25] : memref<8x8x64xf32, #tpu.memory_space<vmem>>, vector<1x8x64xf32>
    %57 = vector.shape_cast %56 : vector<1x8x64xf32> to vector<8x64xf32>
    %cst_26 = arith.constant dense<0.000000e+00> : vector<8x256xf32>
    %58 = tpu.matmul %57, %3, %cst_26 {dimension_numbers = #tpu.dot_dimension_numbers<[1], [0], [0], [1], [0, 0, 1, 1], [], []>} : vector<8x64xf32>, vector<64x256xf32>, vector<8x256xf32> -> vector<8x256xf32>
    %cst_27 = arith.constant dense<0.000000e+00> : vector<8x256xf32>
    %59 = tpu.matmul %39, %4, %cst_27 {dimension_numbers = #tpu.dot_dimension_numbers<[1], [0], [0], [1], [0, 0, 1, 1], [], []>} : vector<8x128xf32>, vector<128x256xf32>, vector<8x256xf32> -> vector<8x256xf32>
    %60 = arith.addf %58, %59 : vector<8x256xf32>
    %61 = vector.broadcast %5 : vector<1x256xf32> to vector<8x256xf32>
    %62 = arith.addf %60, %61 : vector<8x256xf32>
    %63 = vector.extract_strided_slice %62 {offsets = [0, 0], sizes = [8, 128], strides = [1, 1]} : vector<8x256xf32> to vector<8x128xf32>
    %64 = vector.extract_strided_slice %62 {offsets = [0, 128], sizes = [8, 128], strides = [1, 1]} : vector<8x256xf32> to vector<8x128xf32>
    %cst_28 = arith.constant dense<0xFF800000> : vector<8xf32>
    %65 = vector.multi_reduction <maximumf>, %64, %cst_28 [1] : vector<8x128xf32> to vector<8xf32>
    %66 = vector.shape_cast %65 : vector<8xf32> to vector<8x1xf32>
    %67 = vector.broadcast %66 : vector<8x1xf32> to vector<8x128xf32>
    %68 = arith.subf %64, %67 : vector<8x128xf32>
    %69 = math.exp %68 : vector<8x128xf32>
    %cst_29 = arith.constant dense<0.000000e+00> : vector<8xf32>
    %70 = vector.multi_reduction <add>, %69, %cst_29 [1] : vector<8x128xf32> to vector<8xf32>
    %71 = vector.shape_cast %70 : vector<8xf32> to vector<8x1xf32>
    %72 = math.log %71 : vector<8x1xf32>
    %73 = vector.broadcast %72 : vector<8x1xf32> to vector<8x128xf32>
    %74 = arith.subf %68, %73 : vector<8x128xf32>
    %75 = arith.index_cast %c2_i32 : i32 to index
    %c0_30 = arith.constant 0 : index
    %c0_31 = arith.constant 0 : index
    %76 = vector.load %arg6[%75, %c0_30, %c0_31] : memref<8x8x128xf32, #tpu.memory_space<vmem>>, vector<1x8x128xf32>
    %77 = vector.shape_cast %76 : vector<1x8x128xf32> to vector<8x128xf32>
    %78 = vector.shape_cast %74 : vector<8x128xf32> to vector<1x8x128xf32>
    tpu.vector_store %arg6[%75, %c0_30, %c0_31], %78 {strides = array<i32>} : memref<8x8x128xf32, #tpu.memory_space<vmem>>, vector<1x8x128xf32>,
    %c3_i32 = arith.constant 3 : i32
    %79 = arith.index_cast %c3_i32 : i32 to index
    %c0_32 = arith.constant 0 : index
    %c0_33 = arith.constant 0 : index
    %80 = vector.load %arg1[%79, %c0_32, %c0_33] : memref<8x8x64xf32, #tpu.memory_space<vmem>>, vector<1x8x64xf32>
    %81 = vector.shape_cast %80 : vector<1x8x64xf32> to vector<8x64xf32>
    %cst_34 = arith.constant dense<0.000000e+00> : vector<8x256xf32>
    %82 = tpu.matmul %81, %3, %cst_34 {dimension_numbers = #tpu.dot_dimension_numbers<[1], [0], [0], [1], [0, 0, 1, 1], [], []>} : vector<8x64xf32>, vector<64x256xf32>, vector<8x256xf32> -> vector<8x256xf32>
    %cst_35 = arith.constant dense<0.000000e+00> : vector<8x256xf32>
    %83 = tpu.matmul %63, %4, %cst_35 {dimension_numbers = #tpu.dot_dimension_numbers<[1], [0], [0], [1], [0, 0, 1, 1], [], []>} : vector<8x128xf32>, vector<128x256xf32>, vector<8x256xf32> -> vector<8x256xf32>
    %84 = arith.addf %82, %83 : vector<8x256xf32>
    %85 = vector.broadcast %5 : vector<1x256xf32> to vector<8x256xf32>
    %86 = arith.addf %84, %85 : vector<8x256xf32>
    %87 = vector.extract_strided_slice %86 {offsets = [0, 0], sizes = [8, 128], strides = [1, 1]} : vector<8x256xf32> to vector<8x128xf32>
    %88 = vector.extract_strided_slice %86 {offsets = [0, 128], sizes = [8, 128], strides = [1, 1]} : vector<8x256xf32> to vector<8x128xf32>
    %cst_36 = arith.constant dense<0xFF800000> : vector<8xf32>
    %89 = vector.multi_reduction <maximumf>, %88, %cst_36 [1] : vector<8x128xf32> to vector<8xf32>
    %90 = vector.shape_cast %89 : vector<8xf32> to vector<8x1xf32>
    %91 = vector.broadcast %90 : vector<8x1xf32> to vector<8x128xf32>
    %92 = arith.subf %88, %91 : vector<8x128xf32>
    %93 = math.exp %92 : vector<8x128xf32>
    %cst_37 = arith.constant dense<0.000000e+00> : vector<8xf32>
    %94 = vector.multi_reduction <add>, %93, %cst_37 [1] : vector<8x128xf32> to vector<8xf32>
    %95 = vector.shape_cast %94 : vector<8xf32> to vector<8x1xf32>
    %96 = math.log %95 : vector<8x1xf32>
    %97 = vector.broadcast %96 : vector<8x1xf32> to vector<8x128xf32>
    %98 = arith.subf %92, %97 : vector<8x128xf32>
    %99 = arith.index_cast %c3_i32 : i32 to index
    %c0_38 = arith.constant 0 : index
    %c0_39 = arith.constant 0 : index
    %100 = vector.load %arg6[%99, %c0_38, %c0_39] : memref<8x8x128xf32, #tpu.memory_space<vmem>>, vector<1x8x128xf32>
    %101 = vector.shape_cast %100 : vector<1x8x128xf32> to vector<8x128xf32>
    %102 = vector.shape_cast %98 : vector<8x128xf32> to vector<1x8x128xf32>
    tpu.vector_store %arg6[%99, %c0_38, %c0_39], %102 {strides = array<i32>} : memref<8x8x128xf32, #tpu.memory_space<vmem>>, vector<1x8x128xf32>,
    %c4_i32 = arith.constant 4 : i32
    %103 = arith.index_cast %c4_i32 : i32 to index
    %c0_40 = arith.constant 0 : index
    %c0_41 = arith.constant 0 : index
    %104 = vector.load %arg1[%103, %c0_40, %c0_41] : memref<8x8x64xf32, #tpu.memory_space<vmem>>, vector<1x8x64xf32>
    %105 = vector.shape_cast %104 : vector<1x8x64xf32> to vector<8x64xf32>
    %cst_42 = arith.constant dense<0.000000e+00> : vector<8x256xf32>
    %106 = tpu.matmul %105, %3, %cst_42 {dimension_numbers = #tpu.dot_dimension_numbers<[1], [0], [0], [1], [0, 0, 1, 1], [], []>} : vector<8x64xf32>, vector<64x256xf32>, vector<8x256xf32> -> vector<8x256xf32>
    %cst_43 = arith.constant dense<0.000000e+00> : vector<8x256xf32>
    %107 = tpu.matmul %87, %4, %cst_43 {dimension_numbers = #tpu.dot_dimension_numbers<[1], [0], [0], [1], [0, 0, 1, 1], [], []>} : vector<8x128xf32>, vector<128x256xf32>, vector<8x256xf32> -> vector<8x256xf32>
    %108 = arith.addf %106, %107 : vector<8x256xf32>
    %109 = vector.broadcast %5 : vector<1x256xf32> to vector<8x256xf32>
    %110 = arith.addf %108, %109 : vector<8x256xf32>
    %111 = vector.extract_strided_slice %110 {offsets = [0, 0], sizes = [8, 128], strides = [1, 1]} : vector<8x256xf32> to vector<8x128xf32>
    %112 = vector.extract_strided_slice %110 {offsets = [0, 128], sizes = [8, 128], strides = [1, 1]} : vector<8x256xf32> to vector<8x128xf32>
    %cst_44 = arith.constant dense<0xFF800000> : vector<8xf32>
    %113 = vector.multi_reduction <maximumf>, %112, %cst_44 [1] : vector<8x128xf32> to vector<8xf32>
    %114 = vector.shape_cast %113 : vector<8xf32> to vector<8x1xf32>
    %115 = vector.broadcast %114 : vector<8x1xf32> to vector<8x128xf32>
    %116 = arith.subf %112, %115 : vector<8x128xf32>
    %117 = math.exp %116 : vector<8x128xf32>
    %cst_45 = arith.constant dense<0.000000e+00> : vector<8xf32>
    %118 = vector.multi_reduction <add>, %117, %cst_45 [1] : vector<8x128xf32> to vector<8xf32>
    %119 = vector.shape_cast %118 : vector<8xf32> to vector<8x1xf32>
    %120 = math.log %119 : vector<8x1xf32>
    %121 = vector.broadcast %120 : vector<8x1xf32> to vector<8x128xf32>
    %122 = arith.subf %116, %121 : vector<8x128xf32>
    %123 = arith.index_cast %c4_i32 : i32 to index
    %c0_46 = arith.constant 0 : index
    %c0_47 = arith.constant 0 : index
    %124 = vector.load %arg6[%123, %c0_46, %c0_47] : memref<8x8x128xf32, #tpu.memory_space<vmem>>, vector<1x8x128xf32>
    %125 = vector.shape_cast %124 : vector<1x8x128xf32> to vector<8x128xf32>
    %126 = vector.shape_cast %122 : vector<8x128xf32> to vector<1x8x128xf32>
    tpu.vector_store %arg6[%123, %c0_46, %c0_47], %126 {strides = array<i32>} : memref<8x8x128xf32, #tpu.memory_space<vmem>>, vector<1x8x128xf32>,
    %c5_i32 = arith.constant 5 : i32
    %127 = arith.index_cast %c5_i32 : i32 to index
    %c0_48 = arith.constant 0 : index
    %c0_49 = arith.constant 0 : index
    %128 = vector.load %arg1[%127, %c0_48, %c0_49] : memref<8x8x64xf32, #tpu.memory_space<vmem>>, vector<1x8x64xf32>
    %129 = vector.shape_cast %128 : vector<1x8x64xf32> to vector<8x64xf32>
    %cst_50 = arith.constant dense<0.000000e+00> : vector<8x256xf32>
    %130 = tpu.matmul %129, %3, %cst_50 {dimension_numbers = #tpu.dot_dimension_numbers<[1], [0], [0], [1], [0, 0, 1, 1], [], []>} : vector<8x64xf32>, vector<64x256xf32>, vector<8x256xf32> -> vector<8x256xf32>
    %cst_51 = arith.constant dense<0.000000e+00> : vector<8x256xf32>
    %131 = tpu.matmul %111, %4, %cst_51 {dimension_numbers = #tpu.dot_dimension_numbers<[1], [0], [0], [1], [0, 0, 1, 1], [], []>} : vector<8x128xf32>, vector<128x256xf32>, vector<8x256xf32> -> vector<8x256xf32>
    %132 = arith.addf %130, %131 : vector<8x256xf32>
    %133 = vector.broadcast %5 : vector<1x256xf32> to vector<8x256xf32>
    %134 = arith.addf %132, %133 : vector<8x256xf32>
    %135 = vector.extract_strided_slice %134 {offsets = [0, 0], sizes = [8, 128], strides = [1, 1]} : vector<8x256xf32> to vector<8x128xf32>
    %136 = vector.extract_strided_slice %134 {offsets = [0, 128], sizes = [8, 128], strides = [1, 1]} : vector<8x256xf32> to vector<8x128xf32>
    %cst_52 = arith.constant dense<0xFF800000> : vector<8xf32>
    %137 = vector.multi_reduction <maximumf>, %136, %cst_52 [1] : vector<8x128xf32> to vector<8xf32>
    %138 = vector.shape_cast %137 : vector<8xf32> to vector<8x1xf32>
    %139 = vector.broadcast %138 : vector<8x1xf32> to vector<8x128xf32>
    %140 = arith.subf %136, %139 : vector<8x128xf32>
    %141 = math.exp %140 : vector<8x128xf32>
    %cst_53 = arith.constant dense<0.000000e+00> : vector<8xf32>
    %142 = vector.multi_reduction <add>, %141, %cst_53 [1] : vector<8x128xf32> to vector<8xf32>
    %143 = vector.shape_cast %142 : vector<8xf32> to vector<8x1xf32>
    %144 = math.log %143 : vector<8x1xf32>
    %145 = vector.broadcast %144 : vector<8x1xf32> to vector<8x128xf32>
    %146 = arith.subf %140, %145 : vector<8x128xf32>
    %147 = arith.index_cast %c5_i32 : i32 to index
    %c0_54 = arith.constant 0 : index
    %c0_55 = arith.constant 0 : index
    %148 = vector.load %arg6[%147, %c0_54, %c0_55] : memref<8x8x128xf32, #tpu.memory_space<vmem>>, vector<1x8x128xf32>
    %149 = vector.shape_cast %148 : vector<1x8x128xf32> to vector<8x128xf32>
    %150 = vector.shape_cast %146 : vector<8x128xf32> to vector<1x8x128xf32>
    tpu.vector_store %arg6[%147, %c0_54, %c0_55], %150 {strides = array<i32>} : memref<8x8x128xf32, #tpu.memory_space<vmem>>, vector<1x8x128xf32>,
    %c6_i32 = arith.constant 6 : i32
    %151 = arith.index_cast %c6_i32 : i32 to index
    %c0_56 = arith.constant 0 : index
    %c0_57 = arith.constant 0 : index
    %152 = vector.load %arg1[%151, %c0_56, %c0_57] : memref<8x8x64xf32, #tpu.memory_space<vmem>>, vector<1x8x64xf32>
    %153 = vector.shape_cast %152 : vector<1x8x64xf32> to vector<8x64xf32>
    %cst_58 = arith.constant dense<0.000000e+00> : vector<8x256xf32>
    %154 = tpu.matmul %153, %3, %cst_58 {dimension_numbers = #tpu.dot_dimension_numbers<[1], [0], [0], [1], [0, 0, 1, 1], [], []>} : vector<8x64xf32>, vector<64x256xf32>, vector<8x256xf32> -> vector<8x256xf32>
    %cst_59 = arith.constant dense<0.000000e+00> : vector<8x256xf32>
    %155 = tpu.matmul %135, %4, %cst_59 {dimension_numbers = #tpu.dot_dimension_numbers<[1], [0], [0], [1], [0, 0, 1, 1], [], []>} : vector<8x128xf32>, vector<128x256xf32>, vector<8x256xf32> -> vector<8x256xf32>
    %156 = arith.addf %154, %155 : vector<8x256xf32>
    %157 = vector.broadcast %5 : vector<1x256xf32> to vector<8x256xf32>
    %158 = arith.addf %156, %157 : vector<8x256xf32>
    %159 = vector.extract_strided_slice %158 {offsets = [0, 0], sizes = [8, 128], strides = [1, 1]} : vector<8x256xf32> to vector<8x128xf32>
    %160 = vector.extract_strided_slice %158 {offsets = [0, 128], sizes = [8, 128], strides = [1, 1]} : vector<8x256xf32> to vector<8x128xf32>
    %cst_60 = arith.constant dense<0xFF800000> : vector<8xf32>
    %161 = vector.multi_reduction <maximumf>, %160, %cst_60 [1] : vector<8x128xf32> to vector<8xf32>
    %162 = vector.shape_cast %161 : vector<8xf32> to vector<8x1xf32>
    %163 = vector.broadcast %162 : vector<8x1xf32> to vector<8x128xf32>
    %164 = arith.subf %160, %163 : vector<8x128xf32>
    %165 = math.exp %164 : vector<8x128xf32>
    %cst_61 = arith.constant dense<0.000000e+00> : vector<8xf32>
    %166 = vector.multi_reduction <add>, %165, %cst_61 [1] : vector<8x128xf32> to vector<8xf32>
    %167 = vector.shape_cast %166 : vector<8xf32> to vector<8x1xf32>
    %168 = math.log %167 : vector<8x1xf32>
    %169 = vector.broadcast %168 : vector<8x1xf32> to vector<8x128xf32>
    %170 = arith.subf %164, %169 : vector<8x128xf32>
    %171 = arith.index_cast %c6_i32 : i32 to index
    %c0_62 = arith.constant 0 : index
    %c0_63 = arith.constant 0 : index
    %172 = vector.load %arg6[%171, %c0_62, %c0_63] : memref<8x8x128xf32, #tpu.memory_space<vmem>>, vector<1x8x128xf32>
    %173 = vector.shape_cast %172 : vector<1x8x128xf32> to vector<8x128xf32>
    %174 = vector.shape_cast %170 : vector<8x128xf32> to vector<1x8x128xf32>
    tpu.vector_store %arg6[%171, %c0_62, %c0_63], %174 {strides = array<i32>} : memref<8x8x128xf32, #tpu.memory_space<vmem>>, vector<1x8x128xf32>,
    %c7_i32 = arith.constant 7 : i32
    %175 = arith.index_cast %c7_i32 : i32 to index
    %c0_64 = arith.constant 0 : index
    %c0_65 = arith.constant 0 : index
    %176 = vector.load %arg1[%175, %c0_64, %c0_65] : memref<8x8x64xf32, #tpu.memory_space<vmem>>, vector<1x8x64xf32>
    %177 = vector.shape_cast %176 : vector<1x8x64xf32> to vector<8x64xf32>
    %cst_66 = arith.constant dense<0.000000e+00> : vector<8x256xf32>
    %178 = tpu.matmul %177, %3, %cst_66 {dimension_numbers = #tpu.dot_dimension_numbers<[1], [0], [0], [1], [0, 0, 1, 1], [], []>} : vector<8x64xf32>, vector<64x256xf32>, vector<8x256xf32> -> vector<8x256xf32>
    %cst_67 = arith.constant dense<0.000000e+00> : vector<8x256xf32>
    %179 = tpu.matmul %159, %4, %cst_67 {dimension_numbers = #tpu.dot_dimension_numbers<[1], [0], [0], [1], [0, 0, 1, 1], [], []>} : vector<8x128xf32>, vector<128x256xf32>, vector<8x256xf32> -> vector<8x256xf32>
    %180 = arith.addf %178, %179 : vector<8x256xf32>
    %181 = vector.broadcast %5 : vector<1x256xf32> to vector<8x256xf32>
    %182 = arith.addf %180, %181 : vector<8x256xf32>
    %183 = vector.extract_strided_slice %182 {offsets = [0, 0], sizes = [8, 128], strides = [1, 1]} : vector<8x256xf32> to vector<8x128xf32>
    %184 = vector.extract_strided_slice %182 {offsets = [0, 128], sizes = [8, 128], strides = [1, 1]} : vector<8x256xf32> to vector<8x128xf32>
    %cst_68 = arith.constant dense<0xFF800000> : vector<8xf32>
    %185 = vector.multi_reduction <maximumf>, %184, %cst_68 [1] : vector<8x128xf32> to vector<8xf32>
    %186 = vector.shape_cast %185 : vector<8xf32> to vector<8x1xf32>
    %187 = vector.broadcast %186 : vector<8x1xf32> to vector<8x128xf32>
    %188 = arith.subf %184, %187 : vector<8x128xf32>
    %189 = math.exp %188 : vector<8x128xf32>
    %cst_69 = arith.constant dense<0.000000e+00> : vector<8xf32>
    %190 = vector.multi_reduction <add>, %189, %cst_69 [1] : vector<8x128xf32> to vector<8xf32>
    %191 = vector.shape_cast %190 : vector<8xf32> to vector<8x1xf32>
    %192 = math.log %191 : vector<8x1xf32>
    %193 = vector.broadcast %192 : vector<8x1xf32> to vector<8x128xf32>
    %194 = arith.subf %188, %193 : vector<8x128xf32>
    %195 = arith.index_cast %c7_i32 : i32 to index
    %c0_70 = arith.constant 0 : index
    %c0_71 = arith.constant 0 : index
    %196 = vector.load %arg6[%195, %c0_70, %c0_71] : memref<8x8x128xf32, #tpu.memory_space<vmem>>, vector<1x8x128xf32>
    %197 = vector.shape_cast %196 : vector<1x8x128xf32> to vector<8x128xf32>
    %198 = vector.shape_cast %194 : vector<8x128xf32> to vector<1x8x128xf32>
    tpu.vector_store %arg6[%195, %c0_70, %c0_71], %198 {strides = array<i32>} : memref<8x8x128xf32, #tpu.memory_space<vmem>>, vector<1x8x128xf32>,
    %c8_i32 = arith.constant 8 : i32
    %c0_72 = arith.constant 0 : index
    %c0_73 = arith.constant 0 : index
    %199 = vector.load %arg8[%c0_72, %c0_73] : memref<8x128xf32, #tpu.memory_space<vmem>>, vector<8x128xf32>
    tpu.vector_store %arg8[%c0_72, %c0_73], %183 {strides = array<i32>} : memref<8x128xf32, #tpu.memory_space<vmem>>, vector<8x128xf32>,
    %c0_i32_74 = arith.constant 0 : i32
    %200 = arith.cmpi eq, %arg0, %c0_i32_74 : i32
    %201 = arith.extui %200 : i1 to i32
    %c0_i32_75 = arith.constant 0 : i32
    %202 = arith.cmpi ne, %201, %c0_i32_75 : i32
    scf.if %202 {
      %c0_76 = arith.constant 0 : index
      %c0_77 = arith.constant 0 : index
      %203 = vector.load %arg7[%c0_76, %c0_77] : memref<8x128xf32, #tpu.memory_space<vmem>>, vector<8x128xf32>
      tpu.vector_store %arg7[%c0_76, %c0_77], %183 {strides = array<i32>} : memref<8x128xf32, #tpu.memory_space<vmem>>, vector<8x128xf32>,
    } else {
    }
    return
  }
  func.func @transform_0(%arg0: i32) -> (i32, i32, i32) {
    %c0_i32 = arith.constant 0 : i32
    %c0_i32_0 = arith.constant 0 : i32
    %c0_i32_1 = arith.constant 0 : i32
    return %arg0, %c0_i32, %c0_i32_0 : i32, i32, i32
  }
  func.func @transform_1(%arg0: i32) -> (i32, i32) {
    %c0_i32 = arith.constant 0 : i32
    %c0_i32_0 = arith.constant 0 : i32
    %c0_i32_1 = arith.constant 0 : i32
    return %c0_i32, %c0_i32_0 : i32, i32
  }
  func.func @transform_2(%arg0: i32) -> (i32, i32) {
    %c0_i32 = arith.constant 0 : i32
    %c0_i32_0 = arith.constant 0 : i32
    %c0_i32_1 = arith.constant 0 : i32
    return %c0_i32, %c0_i32_0 : i32, i32
  }
  func.func @transform_3(%arg0: i32) -> (i32, i32) {
    %c0_i32 = arith.constant 0 : i32
    %c0_i32_0 = arith.constant 0 : i32
    %c0_i32_1 = arith.constant 0 : i32
    return %c0_i32, %c0_i32_0 : i32, i32
  }
  func.func @transform_4(%arg0: i32) -> (i32, i32) {
    %c0_i32 = arith.constant 0 : i32
    %c0_i32_0 = arith.constant 0 : i32
    %c0_i32_1 = arith.constant 0 : i32
    return %c0_i32, %c0_i32_0 : i32, i32
  }
  func.func @transform_5(%arg0: i32) -> (i32, i32, i32) {
    %c0_i32 = arith.constant 0 : i32
    %c0_i32_0 = arith.constant 0 : i32
    %c0_i32_1 = arith.constant 0 : i32
    return %arg0, %c0_i32, %c0_i32_0 : i32, i32, i32
  }
  func.func @transform_6(%arg0: i32) -> (i32, i32) {
    %c0_i32 = arith.constant 0 : i32
    %c0_i32_0 = arith.constant 0 : i32
    %c0_i32_1 = arith.constant 0 : i32
    return %c0_i32, %c0_i32_0 : i32, i32
  }
}

</mosaic_0001>

<bundles_post_ra>
// kernel: tpu_custom_call.1
= control target key start
LH: loop header
LB: loop body
LE: loop exit
PB: predicated region body
PF: predicated region fallthrough
CT: control target
= control target key end

     0   :  { %12 = vsyncpa [#allocation4], 0  ;;  %s2500_s0 = inlined_call_operand.hbm [shape: f32[8,8,64], index: 0, kind: input, shape index: {}]   ;;  %s2501_s1 = inlined_call_operand.hbm [shape: f32[8,128], index: 1, kind: input, shape index: {}]   ;;  %s2502_s2 = inlined_call_operand.hbm [shape: f32[64,256], index: 2, kind: input, shape index: {}]   ;;  %s2503_s3 = inlined_call_operand.hbm [shape: f32[128,256], index: 3, kind: input, shape index: {}]   ;;  %s2504_s4 = inlined_call_operand.vmem [shape: f32[1,256], index: 4, kind: input, shape index: {}]   ;;  %s2505_s5 = inlined_call_operand.hbm [shape: f32[8,8,128], index: 5, kind: output, shape index: {0}]   ;;  %s2506_s6 = inlined_call_operand.hbm [shape: f32[8,128], index: 6, kind: output, shape index: {1}]  }
   0x1   :  { %13 = vsyncpa [#allocation7], 0 }
   0x2   :  { %14 = vsyncpa [#allocation10], 0 }
   0x3   :  { %15 = vsyncpa [#allocation5], 0 }
   0x4   :  { %16 = vsyncpa [#allocation13], 0  ;;  %s2062_s21 = smov [#allocation6]   ;;  %s2063_s23 = smov [#allocation3]  }
   0x5   :  { %s35_s22 = sshll.u32 %s2062_s21, 4  ;;  %s22_s24 = sshll.u32 %s2063_s23, 4  ;;  %s36_s22 = int_to_ptr.vmem [resolvable:$true] %s35_s22  ;;  %s2108_s24 = int_to_ptr.vmem [resolvable:$true] %s22_s24 }
   0x6   :  { %s1920_s27 = scalar_lea.hbm %s2501_s1, 128 }
   0x7   :  { %p1921_p0 = scmp.ne.s32.totalorder %s2501_s1, %s1920_s27  ;;  %p1924_p1 = scmp.lt.u32.totalorder %s1920_s27, %s2501_s1 }
   0x9   :  { %p1926_p2 = pnand %p1924_p1, %p1921_p0 }
   0xb   :  { %1929 = shalt.err (!%p1926_p2)
}
   0xc   :  { %s1930_s8 = scalar_lea.vmem %s36_s22, 128  ;;  %p1935_p4 = scmp.lt.s32.totalorder %s36_s22, %s36_s22 }
   0xd   :  { %p1931_p3 = scmp.ne.s32.totalorder %s36_s22, %s1930_s8  ;;  %p1936_p5 = scmp.lt.s32.totalorder %s1930_s8, %s1930_s8 }
   0xf   :  { %p1937_p6 = por %p1936_p5, %p1935_p4 }
  0x11   :  { %p1938_p7 = pnand %p1937_p6, %p1931_p3 }
  0x13   :  { %1941 = shalt.err (!%p1938_p7)
}
  0x14   :  { %38 = dma.hbm_to_vmem [thread:$0]  %s2501_s1, 128, %s36_s22, [#allocation7]  }
  0x15   :  { %s1942_s13 = scalar_lea.hbm %s2500_s0, 1024 }
  0x16   :  { %p1943_p8 = scmp.ne.s32.totalorder %s2500_s0, %s1942_s13  ;;  %p1946_p9 = scmp.lt.u32.totalorder %s1942_s13, %s2500_s0 }
  0x18   :  { %p1948_p10 = pnand %p1946_p9, %p1943_p8 }
  0x1a   :  { %1951 = shalt.err (!%p1948_p10)
}
  0x1b   :  { %s1952_s18 = scalar_lea.vmem %s2108_s24, 1024  ;;  %p1957_p12 = scmp.lt.s32.totalorder %s2108_s24, %s2108_s24 }
  0x1c   :  { %p1953_p11 = scmp.ne.s32.totalorder %s2108_s24, %s1952_s18  ;;  %p1958_p13 = scmp.lt.s32.totalorder %s1952_s18, %s1952_s18 }
  0x1e   :  { %p1959_p0 = por %p1958_p13, %p1957_p12 }
  0x20   :  { %p1960_p1 = pnand %p1959_p0, %p1953_p11 }
  0x22   :  { %1963 = shalt.err (!%p1960_p1)
}
  0x23   :  { %s2064_s1 = smov 128   ;;  %s2065_s19 = smov 8  }
  0x24   :  { %28 = dma.hbm_to_vmem [thread:$0]  %s2500_s0, 1024, %s2108_s24, [#allocation4], %s2064_s1, %s2064_s1, %s2065_s19  }
  0x25   :  { %s2066_s22 = smov [#allocation8]   ;;  %s1964_s27 = scalar_lea.hbm %s2502_s2, 2048 }
  0x26   :  { %s44_s23 = sshll.u32 %s2066_s22, 4  ;;  %p1965_p2 = scmp.ne.s32.totalorder %s2502_s2, %s1964_s27  ;;  %s45_s23 = int_to_ptr.vmem [resolvable:$true] %s44_s23 }
  0x27   :  { %p1968_p3 = scmp.lt.u32.totalorder %s1964_s27, %s2502_s2 }
  0x29   :  { %p1970_p4 = pnand %p1968_p3, %p1965_p2 }
  0x2b   :  { %1973 = shalt.err (!%p1970_p4)
}
  0x2c   :  { %s1974_s8 = scalar_lea.vmem %s45_s23, 2048  ;;  %p1979_p6 = scmp.lt.s32.totalorder %s45_s23, %s45_s23 }
  0x2d   :  { %p1975_p5 = scmp.ne.s32.totalorder %s45_s23, %s1974_s8  ;;  %p1980_p7 = scmp.lt.s32.totalorder %s1974_s8, %s1974_s8 }
  0x2f   :  { %p1981_p8 = por %p1980_p7, %p1979_p6 }
  0x31   :  { %p1982_p9 = pnand %p1981_p8, %p1975_p5 }
  0x33   :  { %1985 = shalt.err (!%p1982_p9)
}
  0x34   :  { %s2067_s0 = smov 256   ;;  %s2068_s24 = smov 16  }
  0x35   :  { %50 = dma.hbm_to_vmem [thread:$0]  %s2502_s2, 2048, %s45_s23, [#allocation7], %s2067_s0, %s2067_s0, %s2068_s24  }
  0x36   :  { %s2069_s11 = smov [#allocation9]   ;;  %s1986_s15 = scalar_lea.hbm %s2503_s3, 4096 }
  0x37   :  { %s56_s12 = sshll.u32 %s2069_s11, 4  ;;  %p1987_p10 = scmp.ne.s32.totalorder %s2503_s3, %s1986_s15  ;;  %s57_s12 = int_to_ptr.vmem [resolvable:$true] %s56_s12 }
  0x38   :  { %p1990_p11 = scmp.lt.u32.totalorder %s1986_s15, %s2503_s3 }
  0x3a   :  { %p1992_p12 = pnand %p1990_p11, %p1987_p10 }
  0x3c   :  { %1995 = shalt.err (!%p1992_p12)
}
  0x3d   :  { %s1996_s21 = scalar_lea.vmem %s57_s12, 4096  ;;  %p2001_p0 = scmp.lt.s32.totalorder %s57_s12, %s57_s12 }
  0x3e   :  { %p1997_p13 = scmp.ne.s32.totalorder %s57_s12, %s1996_s21  ;;  %p2002_p1 = scmp.lt.s32.totalorder %s1996_s21, %s1996_s21 }
  0x40   :  { %p2003_p2 = por %p2002_p1, %p2001_p0 }
  0x42   :  { %p2004_p3 = pnand %p2003_p2, %p1997_p13 }
  0x44   :  { %2007 = shalt.err (!%p2004_p3)
}
  0x45   :  { %62 = dma.hbm_to_vmem [thread:$0]  %s2503_s3, 4096, %s57_s12, [#allocation10], %s2067_s0, %s2067_s0, %s2068_s24  }
  0x46   :  { %2052 = dma.done.wait [#allocation4], 1024  }
  0x47   :  { %2053 = vsyncadd [#allocation4], 4294966272 }
  0x48   :  { %2054 = dma.done.wait [#allocation7], 2176  }
  0x49   :  { %2055 = vsyncadd [#allocation7], 4294965120 }
  0x4a   :  { %2056 = dma.done.wait [#allocation10], 4096  }
  0x4b   :  { %2057 = vsyncadd [#allocation10], 4294963200  ;;  %v2070_v0 = vmov 0.0   ;;  %v100_v1 = vld [vmem:[#allocation9 + $0x8] sm:$0xff]  ;;  %v102_v2 = vld [vmem:[#allocation9 + $0x18] sm:$0xff]  ;;  %vm205_vm0 = vcmask 523264  }
  0x4c   :  { %198 = vmatprep.mubr.f32.mxu0 %v2070_v0  ;;  %370 = vmatprep.mubr.f32.mxu1 %v2070_v0  ;;  %v99_v3 = vld [vmem:[#allocation9] sm:$0xff]  ;;  %v2168_v4 = vpack.c.bf16 %v102_v2, %v100_v1  ;;  %v101_v5 = vld [vmem:[#allocation9 + $0x10] sm:$0xff]  ;;  %v104_v6 = vld [vmem:[#allocation9 + $0x28] sm:$0xff] }
  0x4d   :  { %v106_v7 = vld [vmem:[#allocation9 + $0x38] sm:$0xff]  ;;  %v2170_v8 = vpack.c.bf16 %v101_v5, %v99_v3  ;;  %v103_v10 = vld [vmem:[#allocation9 + $0x20] sm:$0xff]  ;;  %v105_v11 = vld [vmem:[#allocation9 + $0x30] sm:$0xff] }
  0x4e   :  { %v2172_v9 = vpack.c.bf16 %v106_v7, %v104_v6  ;;  %v108_v12 = vld [vmem:[#allocation9 + $0x48] sm:$0xff]  ;;  %1478 = vmatprep.subr.bf16.mxu0 %v2168_v4  ;;  %v110_v13 = vld [vmem:[#allocation9 + $0x58] sm:$0xff]  ;;  %1526 = vmatprep.subr.bf16.mxu1 %v2168_v4  ;;  %v2177_v14 = vpack.c.bf16 %v105_v11, %v103_v10  ;;  %v107_v16 = vld [vmem:[#allocation9 + $0x40] sm:$0xff] }
  0x4f   :  { %1480 = vmatpush1.bf16.msra.mxu0 %v2170_v8  ;;  %1528 = vmatpush1.bf16.msra.mxu1 %v2170_v8  ;;  %v2181_v15 = vpack.c.bf16 %v110_v13, %v108_v12  ;;  %v109_v17 = vld [vmem:[#allocation9 + $0x50] sm:$0xff]  ;;  %v112_v18 = vld [vmem:[#allocation9 + $0x68] sm:$0xff]  ;;  %v114_v19 = vld [vmem:[#allocation9 + $0x78] sm:$0xff] }
  0x50   :  { %1482 = vmatprep.subr.bf16.mxu0 %v2172_v9  ;;  %1530 = vmatprep.subr.bf16.mxu1 %v2172_v9  ;;  %v2185_v20 = vpack.c.bf16 %v109_v17, %v107_v16  ;;  %v2189_v21 = vpack.c.bf16 %v114_v19, %v112_v18  ;;  %v111_v22 = vld [vmem:[#allocation9 + $0x60] sm:$0xff]  ;;  %v113_v23 = vld [vmem:[#allocation9 + $0x70] sm:$0xff]  ;;  %v116_v24 = vld [vmem:[#allocation9 + $0x88] sm:$0xff]  ;;  %v281_v17 = vlaneseq }
  0x51   :  { %v118_v25 = vld [vmem:[#allocation9 + $0x98] sm:$0xff]  ;;  %v2193_v26 = vpack.c.bf16 %v113_v23, %v111_v22  ;;  %v115_v28 = vld [vmem:[#allocation9 + $0x80] sm:$0xff]  ;;  %v117_v29 = vld [vmem:[#allocation9 + $0x90] sm:$0xff] }
  0x52   :  { %v2197_v27 = vpack.c.bf16 %v118_v25, %v116_v24  ;;  %v120_v30 = vld [vmem:[#allocation9 + $0xa8] sm:$0xff]  ;;  %v122_v31 = vld [vmem:[#allocation9 + $0xb8] sm:$0xff]  ;;  %v2201_v32 = vpack.c.bf16 %v117_v29, %v115_v28  ;;  %v119_v34 = vld [vmem:[#allocation9 + $0xa0] sm:$0xff]  ;;  %v282_v18 = vshrl.u32 %v281_v17, 7 }
  0x53   :  { %1484 = vmatpush1.bf16.msra.mxu0 %v2177_v14  ;;  %1532 = vmatpush1.bf16.msra.mxu1 %v2177_v14  ;;  %v2205_v33 = vpack.c.bf16 %v122_v31, %v120_v30  ;;  %v121_v35 = vld [vmem:[#allocation9 + $0xb0] sm:$0xff]  ;;  %v124_v36 = vld [vmem:[#allocation9 + $0xc8] sm:$0xff]  ;;  %v126_v37 = vld [vmem:[#allocation9 + $0xd8] sm:$0xff] }
  0x54   :  { %1486 = vmatprep.subr.bf16.mxu0 %v2181_v15  ;;  %1534 = vmatprep.subr.bf16.mxu1 %v2181_v15  ;;  %v2209_v38 = vpack.c.bf16 %v121_v35, %v119_v34  ;;  %v2213_v39 = vpack.c.bf16 %v126_v37, %v124_v36  ;;  %v123_v40 = vld [vmem:[#allocation9 + $0xc0] sm:$0xff]  ;;  %v125_v41 = vld [vmem:[#allocation9 + $0xd0] sm:$0xff]  ;;  %v128_v42 = vld [vmem:[#allocation9 + $0xe8] sm:$0xff]  ;;  %v283_v19 = vsub.s32 0, %v282_v18  ;;  %v287_v23 = vsub.s32 1, %v282_v18 }
  0x55   :  { %v130_v43 = vld [vmem:[#allocation9 + $0xf8] sm:$0xff]  ;;  %v2217_v44 = vpack.c.bf16 %v125_v41, %v123_v40  ;;  %v127_v46 = vld [vmem:[#allocation9 + $0xe0] sm:$0xff]  ;;  %v129_v47 = vld [vmem:[#allocation9 + $0xf0] sm:$0xff] }
  0x56   :  { %v2221_v45 = vpack.c.bf16 %v130_v43, %v128_v42  ;;  %v84_v48 = vld [vmem:[#allocation8 + $0x8] sm:$0xff]  ;;  %v86_v49 = vld [vmem:[#allocation8 + $0x18] sm:$0xff]  ;;  %v2225_v50 = vpack.c.bf16 %v129_v47, %v127_v46  ;;  %v83_v52 = vld [vmem:[#allocation8] sm:$0xff] }
  0x57   :  { %1488 = vmatpush1.bf16.msra.mxu0 %v2185_v20  ;;  %1536 = vmatpush1.bf16.msra.mxu1 %v2185_v20  ;;  %v2229_v51 = vpack.c.bf16 %v86_v49, %v84_v48  ;;  %v85_v53 = vld [vmem:[#allocation8 + $0x10] sm:$0xff]  ;;  %v88_v54 = vld [vmem:[#allocation8 + $0x28] sm:$0xff]  ;;  %v90_v55 = vld [vmem:[#allocation8 + $0x38] sm:$0xff] }
  0x58   :  { %1490 = vmatprep.subr.bf16.mxu0 %v2189_v21  ;;  %1538 = vmatprep.subr.bf16.mxu1 %v2189_v21  ;;  %v81_v56 = vld [vmem:[#allocation6] sm:$0xff]  ;;  %v2233_v57 = vpack.c.bf16 %v85_v53, %v83_v52  ;;  %v2237_v58 = vpack.c.bf16 %v90_v55, %v88_v54  ;;  %v87_v59 = vld [vmem:[#allocation8 + $0x20] sm:$0xff]  ;;  %v89_v60 = vld [vmem:[#allocation8 + $0x30] sm:$0xff] }
  0x59   :  { %v92_v61 = vld [vmem:[#allocation8 + $0x48] sm:$0xff]  ;;  %v94_v62 = vld [vmem:[#allocation8 + $0x58] sm:$0xff]  ;;  %v2241_v63 = vpack.c.bf16 %v89_v60, %v87_v59  ;;  %v91_v2 = vld [vmem:[#allocation8 + $0x40] sm:$0xff] }
  0x5a   :  { %v2245_v1 = vpack.c.bf16 %v94_v62, %v92_v61  ;;  %v93_v3 = vld [vmem:[#allocation8 + $0x50] sm:$0xff]  ;;  %v96_v5 = vld [vmem:[#allocation8 + $0x68] sm:$0xff]  ;;  %v98_v6 = vld [vmem:[#allocation8 + $0x78] sm:$0xff] }
  0x5b   :  { %1492 = vmatpush1.bf16.msra.mxu0 %v2193_v26  ;;  %1540 = vmatpush1.bf16.msra.mxu1 %v2193_v26  ;;  %v2248_v7 = vpack.c.bf16 %v93_v3, %v91_v2  ;;  %v2251_v10 = vpack.c.bf16 %v98_v6, %v96_v5  ;;  %v95_v11 = vld [vmem:[#allocation8 + $0x60] sm:$0xff]  ;;  %v97_v12 = vld [vmem:[#allocation8 + $0x70] sm:$0xff]  ;;  %v133_v16 = vld [vmem:[#allocation3] sm:$0xff] }
  0x5c   :  { %1494 = vmatprep.subr.bf16.mxu0 %v2197_v27  ;;  %1542 = vmatprep.subr.bf16.mxu1 %v2197_v27  ;;  %v2254_v13 = vpack.c.bf16 %v97_v12, %v95_v11  ;;  %v131_v22 = vld [vmem:[%s2504_s4] sm:$0x3]  ;;  %v305_v34 = vld [vmem:[#allocation3 + $0x8] sm:$0xff]  ;;  %v466_v41 = vld [vmem:[#allocation3 + $0x10] sm:$0xff]  ;;  %s2071_s4 = smov [#allocation12]  }
  0x5d   :  { %v2280_v24 = vrot.slane %v131_v22, %v283_v19  ;;  %v2282_v25 = vrot.slane %v131_v22, %v287_v23  ;;  %v627_v48 = vld [vmem:[#allocation3 + $0x18] sm:$0xff]  ;;  %v788_v55 = vld [vmem:[#allocation3 + $0x20] sm:$0xff]  ;;  %v949_v62 = vld [vmem:[#allocation3 + $0x28] sm:$0xff]  ;;  %s1454_s25 = sshll.u32 %s2071_s4, 4  ;;  %s1455_s25 = int_to_ptr.vmem [resolvable:$true] %s1454_s25 }
  0x5e   :  { %s2008_s26 = scalar_lea.vmem %s1455_s25, 128  ;;  %p2013_p5 = scmp.lt.s32.totalorder %s1455_s25, %s1455_s25 }
  0x5f   :  { %1496 = vmatpush1.bf16.msra.mxu0 %v2201_v32  ;;  %1544 = vmatpush1.bf16.msra.mxu1 %v2201_v32  ;;  %p2009_p4 = scmp.ne.s32.totalorder %s1455_s25, %s2008_s26  ;;  %p2014_p6 = scmp.lt.s32.totalorder %s2008_s26, %s2008_s26 }
  0x60   :  { %1498 = vmatprep.subr.bf16.mxu0 %v2205_v33  ;;  %1546 = vmatprep.subr.bf16.mxu1 %v2205_v33 }
  0x61   :  { %p2015_p7 = por %p2014_p6, %p2013_p5 }
  0x63   :  { %1500 = vmatpush1.bf16.msra.mxu0 %v2209_v38  ;;  %1548 = vmatpush1.bf16.msra.mxu1 %v2209_v38  ;;  %p2016_p8 = pnand %p2015_p7, %p2009_p4 }
  0x64   :  { %1502 = vmatprep.subr.bf16.mxu0 %v2213_v39  ;;  %1550 = vmatprep.subr.bf16.mxu1 %v2213_v39 }
  0x67   :  { %1504 = vmatpush1.bf16.msra.mxu0 %v2217_v44  ;;  %1552 = vmatpush1.bf16.msra.mxu1 %v2217_v44 }
  0x68   :  { %1506 = vmatprep.subr.bf16.mxu0 %v2221_v45  ;;  %1554 = vmatprep.subr.bf16.mxu1 %v2221_v45 }
  0x6b   :  { %1508 = vmatpush1.bf16.msra.mxu0 %v2225_v50  ;;  %1556 = vmatpush1.bf16.msra.mxu1 %v2225_v50 }
  0x6c   :  { %1510 = vmatprep.subr.bf16.mxu0 %v2229_v51  ;;  %1558 = vmatprep.subr.bf16.mxu1 %v2229_v51 }
  0x6e   :  { %199 = vmatmul.mubr.f32.vlgmr.msra.gmra.mrb[0].mxu0 %v81_v56 }
  0x6f   :  { %1512 = vmatpush1.bf16.msra.mxu0 %v2233_v57  ;;  %273 = vmatprep.mubr.f32.mxu0 %v2070_v0 }
  0x70   :  { %1514 = vmatprep.subr.bf16.mxu0 %v2237_v58 }
  0x73   :  { %1516 = vmatpush1.bf16.msra.mxu0 %v2241_v63 }
  0x74   :  { %1518 = vmatprep.subr.bf16.mxu0 %v2245_v1 }
  0x77   :  { %1520 = vmatpush1.bf16.msra.mxu0 %v2248_v7 }
  0x78   :  { %1522 = vmatprep.subr.bf16.mxu0 %v2251_v10 }
  0x7b   :  { %1524 = vmatpush1.bf16.msra.mxu0 %v2254_v13 }
  0x7c   :  { %1574 = vmatprep.subr.bf16.mxu0 %v2168_v4 }
  0x7e   :  { %1469 = vmatmul.mubr.msk.f32.vlgmr.msra.gmra.mrb[0].mxu0 %vm205_vm0, %v133_v16 }
  0x7f   :  { %1576 = vmatpush1.bf16.msra.mxu0 %v2170_v8  ;;  %531 = vmatprep.mubr.f32.mxu0 %v2070_v0 }
  0x80   :  { %1578 = vmatprep.subr.bf16.mxu0 %v2172_v9 }
  0x83   :  { %1580 = vmatpush1.bf16.msra.mxu0 %v2177_v14 }
  0x84   :  { %1582 = vmatprep.subr.bf16.mxu0 %v2181_v15 }
  0x87   :  { %1584 = vmatpush1.bf16.msra.mxu0 %v2185_v20 }
  0x88   :  { %1586 = vmatprep.subr.bf16.mxu0 %v2189_v21 }
  0x8b   :  { %1588 = vmatpush1.bf16.msra.mxu0 %v2193_v26 }
  0x8c   :  { %1590 = vmatprep.subr.bf16.mxu0 %v2197_v27 }
  0x8f   :  { %1592 = vmatpush1.bf16.msra.mxu0 %v2201_v32 }
  0x90   :  { %1594 = vmatprep.subr.bf16.mxu0 %v2205_v33 }
  0x93   :  { %1596 = vmatpush1.bf16.msra.mxu0 %v2209_v38 }
  0x94   :  { %1598 = vmatprep.subr.bf16.mxu0 %v2213_v39 }
  0x97   :  { %1600 = vmatpush1.bf16.msra.mxu0 %v2217_v44 }
  0x98   :  { %1602 = vmatprep.subr.bf16.mxu0 %v2221_v45 }
  0x9b   :  { %1604 = vmatpush1.bf16.msra.mxu0 %v2225_v50 }
  0x9c   :  { %1606 = vmatprep.subr.bf16.mxu0 %v2229_v51 }
 0x151   :  { %v275_v28 = vpop.f32.mrb[0].mxu0 }
 0x152   :  { %v291_v29 = vadd.f32 %v2280_v24, %v275_v28  ;;  %v277_v30 = vpop.f32.mrb[1].mxu0 }
 0x153   :  { %v2286_v31 = vadd.f32 %v2282_v25, %v277_v30 }
 0x154   :  { %371 = vmatmul.mubr.f32.vlgmr.msra.gmra.mrb[0].mxu1 %v291_v29 }
 0x155   :  { %1560 = vmatpush1.bf16.msra.mxu1 %v2233_v57  ;;  %293 = vmax.xlane.f32.xlu0 %v2286_v31 }
 0x156   :  { %1562 = vmatprep.subr.bf16.mxu1 %v2237_v58  ;;  %444 = vmatprep.mubr.f32.mxu1 %v2070_v0 }
 0x159   :  { %1564 = vmatpush1.bf16.msra.mxu1 %v2241_v63 }
 0x15a   :  { %1566 = vmatprep.subr.bf16.mxu1 %v2245_v1 }
 0x15d   :  { %1568 = vmatpush1.bf16.msra.mxu1 %v2248_v7 }
 0x15e   :  { %1570 = vmatprep.subr.bf16.mxu1 %v2251_v10 }
 0x161   :  { %1572 = vmatpush1.bf16.msra.mxu1 %v2254_v13 }
 0x162   :  { %1622 = vmatprep.subr.bf16.mxu1 %v2168_v4 }
 0x164   :  { %1470 = vmatmul.mubr.msk.f32.vlgmr.msra.gmra.mrb[0].mxu1 %vm205_vm0, %v305_v34 }
 0x165   :  { %1624 = vmatpush1.bf16.msra.mxu1 %v2170_v8  ;;  %692 = vmatprep.mubr.f32.mxu1 %v2070_v0 }
 0x166   :  { %1626 = vmatprep.subr.bf16.mxu1 %v2172_v9 }
 0x169   :  { %1628 = vmatpush1.bf16.msra.mxu1 %v2177_v14 }
 0x16a   :  { %1630 = vmatprep.subr.bf16.mxu1 %v2181_v15 }
 0x16d   :  { %1632 = vmatpush1.bf16.msra.mxu1 %v2185_v20 }
 0x16e   :  { %1634 = vmatprep.subr.bf16.mxu1 %v2189_v21 }
 0x171   :  { %1636 = vmatpush1.bf16.msra.mxu1 %v2193_v26 }
 0x172   :  { %1638 = vmatprep.subr.bf16.mxu1 %v2197_v27 }
 0x175   :  { %1640 = vmatpush1.bf16.msra.mxu1 %v2201_v32 }
 0x176   :  { %1642 = vmatprep.subr.bf16.mxu1 %v2205_v33 }
 0x179   :  { %1644 = vmatpush1.bf16.msra.mxu1 %v2209_v38 }
 0x17a   :  { %1646 = vmatprep.subr.bf16.mxu1 %v2213_v39 }
 0x17d   :  { %1648 = vmatpush1.bf16.msra.mxu1 %v2217_v44 }
 0x17e   :  { %1650 = vmatprep.subr.bf16.mxu1 %v2221_v45 }
 0x181   :  { %1652 = vmatpush1.bf16.msra.mxu1 %v2225_v50 }
 0x182   :  { %1654 = vmatprep.subr.bf16.mxu1 %v2229_v51 }
 0x237   :  { %v446_v35 = vpop.f32.mrb[0].mxu1 }
 0x238   :  { %v451_v36 = vadd.f32 %v446_v35, %v2280_v24  ;;  %v448_v37 = vpop.f32.mrb[1].mxu1 }
 0x239   :  { %v2318_v40 = vadd.f32 %v448_v37, %v2282_v25 }
 0x23a   :  { %532 = vmatmul.mubr.f32.vlgmr.msra.gmra.mrb[2].mxu0 %v451_v36 }
 0x23b   :  { %1608 = vmatpush1.bf16.msra.mxu0 %v2233_v57  ;;  %453 = vmax.xlane.f32.xlu0 %v2318_v40 }
 0x23c   :  { %1610 = vmatprep.subr.bf16.mxu0 %v2237_v58  ;;  %605 = vmatprep.mubr.f32.mxu0 %v2070_v0 }
 0x23f   :  { %1612 = vmatpush1.bf16.msra.mxu0 %v2241_v63 }
 0x240   :  { %1614 = vmatprep.subr.bf16.mxu0 %v2245_v1 }
 0x243   :  { %1616 = vmatpush1.bf16.msra.mxu0 %v2248_v7 }
 0x244   :  { %1618 = vmatprep.subr.bf16.mxu0 %v2251_v10 }
 0x247   :  { %1620 = vmatpush1.bf16.msra.mxu0 %v2254_v13 }
 0x248   :  { %1670 = vmatprep.subr.bf16.mxu0 %v2168_v4 }
 0x24a   :  { %1471 = vmatmul.mubr.msk.f32.vlgmr.msra.gmra.mrb[2].mxu0 %vm205_vm0, %v466_v41 }
 0x24b   :  { %1672 = vmatpush1.bf16.msra.mxu0 %v2170_v8  ;;  %853 = vmatprep.mubr.f32.mxu0 %v2070_v0 }
 0x24c   :  { %1674 = vmatprep.subr.bf16.mxu0 %v2172_v9 }
 0x24f   :  { %1676 = vmatpush1.bf16.msra.mxu0 %v2177_v14 }
 0x250   :  { %1678 = vmatprep.subr.bf16.mxu0 %v2181_v15 }
 0x253   :  { %1680 = vmatpush1.bf16.msra.mxu0 %v2185_v20 }
 0x254   :  { %1682 = vmatprep.subr.bf16.mxu0 %v2189_v21 }
 0x257   :  { %1684 = vmatpush1.bf16.msra.mxu0 %v2193_v26 }
 0x258   :  { %1686 = vmatprep.subr.bf16.mxu0 %v2197_v27 }
 0x25b   :  { %1688 = vmatpush1.bf16.msra.mxu0 %v2201_v32 }
 0x25c   :  { %1690 = vmatprep.subr.bf16.mxu0 %v2205_v33 }
 0x25f   :  { %1692 = vmatpush1.bf16.msra.mxu0 %v2209_v38 }
 0x260   :  { %1694 = vmatprep.subr.bf16.mxu0 %v2213_v39 }
 0x263   :  { %1696 = vmatpush1.bf16.msra.mxu0 %v2217_v44 }
 0x264   :  { %1698 = vmatprep.subr.bf16.mxu0 %v2221_v45 }
 0x267   :  { %1700 = vmatpush1.bf16.msra.mxu0 %v2225_v50 }
 0x268   :  { %1702 = vmatprep.subr.bf16.mxu0 %v2229_v51 }
 0x31d   :  { %v607_v42 = vpop.f32.mrb[2].mxu0 }
 0x31e   :  { %v612_v43 = vadd.f32 %v607_v42, %v2280_v24  ;;  %v609_v46 = vpop.f32.mrb[3].mxu0 }
 0x31f   :  { %v2350_v47 = vadd.f32 %v609_v46, %v2282_v25 }
 0x320   :  { %693 = vmatmul.mubr.f32.vlgmr.msra.gmra.mrb[2].mxu1 %v612_v43 }
 0x321   :  { %1656 = vmatpush1.bf16.msra.mxu1 %v2233_v57  ;;  %614 = vmax.xlane.f32.xlu1 %v2350_v47 }
 0x322   :  { %1658 = vmatprep.subr.bf16.mxu1 %v2237_v58  ;;  %766 = vmatprep.mubr.f32.mxu1 %v2070_v0 }
 0x325   :  { %1660 = vmatpush1.bf16.msra.mxu1 %v2241_v63 }
 0x326   :  { %1662 = vmatprep.subr.bf16.mxu1 %v2245_v1 }
 0x329   :  { %1664 = vmatpush1.bf16.msra.mxu1 %v2248_v7 }
 0x32a   :  { %1666 = vmatprep.subr.bf16.mxu1 %v2251_v10 }
 0x32d   :  { %1668 = vmatpush1.bf16.msra.mxu1 %v2254_v13 }
 0x32e   :  { %1718 = vmatprep.subr.bf16.mxu1 %v2168_v4 }
 0x330   :  { %1472 = vmatmul.mubr.msk.f32.vlgmr.msra.gmra.mrb[2].mxu1 %vm205_vm0, %v627_v48 }
 0x331   :  { %1720 = vmatpush1.bf16.msra.mxu1 %v2170_v8  ;;  %1014 = vmatprep.mubr.f32.mxu1 %v2070_v0 }
 0x332   :  { %1722 = vmatprep.subr.bf16.mxu1 %v2172_v9 }
 0x335   :  { %1724 = vmatpush1.bf16.msra.mxu1 %v2177_v14 }
 0x336   :  { %1726 = vmatprep.subr.bf16.mxu1 %v2181_v15 }
 0x339   :  { %1728 = vmatpush1.bf16.msra.mxu1 %v2185_v20 }
 0x33a   :  { %1730 = vmatprep.subr.bf16.mxu1 %v2189_v21 }
 0x33d   :  { %1732 = vmatpush1.bf16.msra.mxu1 %v2193_v26 }
 0x33e   :  { %1734 = vmatprep.subr.bf16.mxu1 %v2197_v27 }
 0x341   :  { %1736 = vmatpush1.bf16.msra.mxu1 %v2201_v32 }
 0x342   :  { %1738 = vmatprep.subr.bf16.mxu1 %v2205_v33 }
 0x345   :  { %1740 = vmatpush1.bf16.msra.mxu1 %v2209_v38 }
 0x346   :  { %1742 = vmatprep.subr.bf16.mxu1 %v2213_v39 }
 0x349   :  { %1744 = vmatpush1.bf16.msra.mxu1 %v2217_v44 }
 0x34a   :  { %1746 = vmatprep.subr.bf16.mxu1 %v2221_v45 }
 0x34d   :  { %1748 = vmatpush1.bf16.msra.mxu1 %v2225_v50 }
 0x34e   :  { %1750 = vmatprep.subr.bf16.mxu1 %v2229_v51 }
 0x403   :  { %v768_v49 = vpop.f32.mrb[2].mxu1 }
 0x404   :  { %v773_v52 = vadd.f32 %v768_v49, %v2280_v24  ;;  %v770_v53 = vpop.f32.mrb[3].mxu1 }
 0x405   :  { %v2382_v54 = vadd.f32 %v770_v53, %v2282_v25 }
 0x406   :  { %854 = vmatmul.mubr.f32.vlgmr.msra.gmra.mrb[4].mxu0 %v773_v52 }
 0x407   :  { %1704 = vmatpush1.bf16.msra.mxu0 %v2233_v57  ;;  %775 = vmax.xlane.f32.xlu1 %v2382_v54 }
 0x408   :  { %1706 = vmatprep.subr.bf16.mxu0 %v2237_v58  ;;  %927 = vmatprep.mubr.f32.mxu0 %v2070_v0 }
 0x40b   :  { %1708 = vmatpush1.bf16.msra.mxu0 %v2241_v63 }
 0x40c   :  { %1710 = vmatprep.subr.bf16.mxu0 %v2245_v1 }
 0x40f   :  { %1712 = vmatpush1.bf16.msra.mxu0 %v2248_v7 }
 0x410   :  { %1714 = vmatprep.subr.bf16.mxu0 %v2251_v10 }
 0x413   :  { %1716 = vmatpush1.bf16.msra.mxu0 %v2254_v13 }
 0x414   :  { %1766 = vmatprep.subr.bf16.mxu0 %v2168_v4 }
 0x416   :  { %1473 = vmatmul.mubr.msk.f32.vlgmr.msra.gmra.mrb[4].mxu0 %vm205_vm0, %v788_v55 }
 0x417   :  { %1768 = vmatpush1.bf16.msra.mxu0 %v2170_v8  ;;  %1175 = vmatprep.mubr.f32.mxu0 %v2070_v0 }
 0x418   :  { %1770 = vmatprep.subr.bf16.mxu0 %v2172_v9 }
 0x41b   :  { %1772 = vmatpush1.bf16.msra.mxu0 %v2177_v14 }
 0x41c   :  { %1774 = vmatprep.subr.bf16.mxu0 %v2181_v15 }
 0x41f   :  { %1776 = vmatpush1.bf16.msra.mxu0 %v2185_v20 }
 0x420   :  { %1778 = vmatprep.subr.bf16.mxu0 %v2189_v21 }
 0x423   :  { %1780 = vmatpush1.bf16.msra.mxu0 %v2193_v26 }
 0x424   :  { %1782 = vmatprep.subr.bf16.mxu0 %v2197_v27 }
 0x427   :  { %1784 = vmatpush1.bf16.msra.mxu0 %v2201_v32 }
 0x428   :  { %1786 = vmatprep.subr.bf16.mxu0 %v2205_v33 }
 0x42b   :  { %1788 = vmatpush1.bf16.msra.mxu0 %v2209_v38 }
 0x42c   :  { %1790 = vmatprep.subr.bf16.mxu0 %v2213_v39 }
 0x42f   :  { %1792 = vmatpush1.bf16.msra.mxu0 %v2217_v44 }
 0x430   :  { %1794 = vmatprep.subr.bf16.mxu0 %v2221_v45 }
 0x433   :  { %1796 = vmatpush1.bf16.msra.mxu0 %v2225_v50 }
 0x434   :  { %1798 = vmatprep.subr.bf16.mxu0 %v2229_v51 }
 0x4e9   :  { %v929_v56 = vpop.f32.mrb[4].mxu0 }
 0x4ea   :  { %v934_v59 = vadd.f32 %v929_v56, %v2280_v24  ;;  %v931_v60 = vpop.f32.mrb[5].mxu0 }
 0x4eb   :  { %v935_v61 = vadd.f32 %v931_v60, %v2282_v25 }
 0x4ec   :  { %1015 = vmatmul.mubr.f32.vlgmr.msra.gmra.mrb[4].mxu1 %v934_v59 }
 0x4ed   :  { %1752 = vmatpush1.bf16.msra.mxu1 %v2233_v57  ;;  %936 = vmax.xlane.f32.xlu0 %v935_v61 }
 0x4ee   :  { %1754 = vmatprep.subr.bf16.mxu1 %v2237_v58  ;;  %1088 = vmatprep.mubr.f32.mxu1 %v2070_v0 }
 0x4f1   :  { %1756 = vmatpush1.bf16.msra.mxu1 %v2241_v63 }
 0x4f2   :  { %1758 = vmatprep.subr.bf16.mxu1 %v2245_v1 }
 0x4f5   :  { %1760 = vmatpush1.bf16.msra.mxu1 %v2248_v7 }
 0x4f6   :  { %1762 = vmatprep.subr.bf16.mxu1 %v2251_v10 }
 0x4f9   :  { %1764 = vmatpush1.bf16.msra.mxu1 %v2254_v13 }
 0x4fa   :  { %1814 = vmatprep.subr.bf16.mxu1 %v2168_v4 }
 0x4fc   :  { %1474 = vmatmul.mubr.msk.f32.vlgmr.msra.gmra.mrb[4].mxu1 %vm205_vm0, %v949_v62 }
 0x4fd   :  { %1816 = vmatpush1.bf16.msra.mxu1 %v2170_v8  ;;  %1336 = vmatprep.mubr.f32.mxu1 %v2070_v0 }
 0x4fe   :  { %1818 = vmatprep.subr.bf16.mxu1 %v2172_v9 }
 0x501   :  { %1820 = vmatpush1.bf16.msra.mxu1 %v2177_v14 }
 0x502   :  { %1822 = vmatprep.subr.bf16.mxu1 %v2181_v15  ;;  %v1110_v15 = vld [vmem:[#allocation3 + $0x30] sm:$0xff] }
 0x505   :  { %1824 = vmatpush1.bf16.msra.mxu1 %v2185_v20  ;;  %v294_v20 = vpop.xlane.xlu0 %293 }
 0x506   :  { %1826 = vmatprep.subr.bf16.mxu1 %v2189_v21  ;;  %v295_v21 = vsub.f32 %v2286_v31, %v294_v20 }
 0x509   :  { %1828 = vmatpush1.bf16.msra.mxu1 %v2193_v26  ;;  %v454_v26 = vpop.xlane.xlu0 %453 }
 0x50a   :  { %1830 = vmatprep.subr.bf16.mxu1 %v2197_v27  ;;  %v615_v27 = vpop.xlane.xlu1 %614  ;;  %v455_v30 = vsub.f32 %v2318_v40, %v454_v26 }
 0x50c   :  { %v456_v34 = vmul.f32 1.442695, %v455_v30 }
 0x50d   :  { %1832 = vmatpush1.bf16.msra.mxu1 %v2201_v32  ;;  %v296_v32 = vmul.f32 1.442695, %v295_v21 }
 0x50e   :  { %1834 = vmatprep.subr.bf16.mxu1 %v2205_v33  ;;  %v616_v33 = vsub.f32 %v2350_v47, %v615_v27  ;;  %v776_v31 = vpop.xlane.xlu1 %775 }
 0x50f   :  { %1888 = vpow2.f32 %v296_v32  ;;  %v777_v35 = vsub.f32 %v2382_v54, %v776_v31 }
 0x511   :  { %1836 = vmatpush1.bf16.msra.mxu1 %v2209_v38  ;;  %v778_v37 = vmul.f32 1.442695, %v777_v35 }
 0x512   :  { %1838 = vmatprep.subr.bf16.mxu1 %v2213_v39  ;;  %v617_v39 = vmul.f32 1.442695, %v616_v33 }
 0x514   :  { %1890 = vpow2.f32 %v617_v39 }
 0x515   :  { %1840 = vmatpush1.bf16.msra.mxu1 %v2217_v44 }
 0x516   :  { %1842 = vmatprep.subr.bf16.mxu1 %v2221_v45 }
 0x519   :  { %1844 = vmatpush1.bf16.msra.mxu1 %v2225_v50  ;;  %v1889_v5 = vpop.eup %1888 }
 0x51a   :  { %1846 = vmatprep.subr.bf16.mxu1 %v2229_v51 }
 0x51e   :  { %v1891_v6 = vpop.eup %1890 }
 0x57a   :  { %v937_v38 = vpop.xlane.xlu0 %936 }
 0x57b   :  { %v938_v44 = vsub.f32 %v935_v61, %v937_v38 }
 0x57d   :  { %v939_v50 = vmul.f32 1.442695, %v938_v44 }
 0x57f   :  { %1892 = vpow2.f32 %v939_v50 }
 0x589   :  { %v1893_v11 = vpop.eup %1892 }
 0x5cf   :  { %v1090_v4 = vpop.f32.mrb[4].mxu1 }
 0x5d0   :  { %v1095_v8 = vadd.f32 %v1090_v4, %v2280_v24  ;;  %v1092_v9 = vpop.f32.mrb[5].mxu1 }
 0x5d1   :  { %v2443_v14 = vadd.f32 %v1092_v9, %v2282_v25 }
 0x5d2   :  { %1176 = vmatmul.mubr.f32.vlgmr.msra.gmra.mrb[6].mxu0 %v1095_v8 }
 0x5d3   :  { %1800 = vmatpush1.bf16.msra.mxu0 %v2233_v57  ;;  %1097 = vmax.xlane.f32.xlu1 %v2443_v14 }
 0x5d4   :  { %1802 = vmatprep.subr.bf16.mxu0 %v2237_v58  ;;  %1249 = vmatprep.mubr.f32.mxu0 %v2070_v0 }
 0x5d7   :  { %1804 = vmatpush1.bf16.msra.mxu0 %v2241_v63 }
 0x5d8   :  { %1806 = vmatprep.subr.bf16.mxu0 %v2245_v1 }
 0x5db   :  { %1808 = vmatpush1.bf16.msra.mxu0 %v2248_v7 }
 0x5dc   :  { %1810 = vmatprep.subr.bf16.mxu0 %v2251_v10 }
 0x5df   :  { %1812 = vmatpush1.bf16.msra.mxu0 %v2254_v13 }
 0x5e2   :  { %1475 = vmatmul.mubr.msk.f32.vlgmr.msra.gmra.mrb[6].mxu0 %vm205_vm0, %v1110_v15 }
 0x660   :  { %v1098_v36 = vpop.xlane.xlu1 %1097 }
 0x661   :  { %v1099_v41 = vsub.f32 %v2443_v14, %v1098_v36 }
 0x663   :  { %v1100_v43 = vmul.f32 1.442695, %v1099_v41 }
 0x6b5   :  { %v1251_v45 = vpop.f32.mrb[6].mxu0 }
 0x6b6   :  { %v1256_v51 = vadd.f32 %v1251_v45, %v2280_v24  ;;  %v1253_v2 = vpop.f32.mrb[7].mxu0 }
 0x6b7   :  { %v1257_v3 = vadd.f32 %v1253_v2, %v2282_v25 }
 0x6b8   :  { %1337 = vmatmul.mubr.f32.vlgmr.msra.gmra.mrb[6].mxu1 %v1256_v51 }
 0x6b9   :  { %1848 = vmatpush1.bf16.msra.mxu1 %v2233_v57  ;;  %1258 = vmax.xlane.f32.xlu0 %v1257_v3  ;;  %v1271_v57 = vld [vmem:[#allocation3 + $0x38] sm:$0xff] }
 0x6ba   :  { %1850 = vmatprep.subr.bf16.mxu1 %v2237_v58  ;;  %1410 = vmatprep.mubr.f32.mxu1 %v2070_v0 }
 0x6bd   :  { %1852 = vmatpush1.bf16.msra.mxu1 %v2241_v63  ;;  %298 = vadd.xlane.f32.xlu0 %v1889_v5 }
 0x6be   :  { %1854 = vmatprep.subr.bf16.mxu1 %v2245_v1 }
 0x6c1   :  { %1856 = vmatpush1.bf16.msra.mxu1 %v2248_v7  ;;  %619 = vadd.xlane.f32.xlu0 %v1891_v6 }
 0x6c2   :  { %1858 = vmatprep.subr.bf16.mxu1 %v2251_v10 }
 0x6c5   :  { %1860 = vmatpush1.bf16.msra.mxu1 %v2254_v13  ;;  %941 = vadd.xlane.f32.xlu0 %v1893_v11 }
 0x6c8   :  { %1476 = vmatmul.mubr.msk.f32.vlgmr.msra.gmra.mrb[6].mxu1 %vm205_vm0, %v1271_v57 }
 0x746   :  { %v1259_v0 = vpop.xlane.xlu0 %1258 }
 0x747   :  { %v1260_v58 = vsub.f32 %v1257_v3, %v1259_v0 }
 0x749   :  { %v1261_v12 = vmul.f32 1.442695, %v1260_v58 }
 0x74a   :  { %v299_v63 = vpop.xlane.xlu0 %298 }
 0x74b   :  { %1894 = vpow2.f32 %v1261_v12 }
 0x74c   :  { %1896 = vlog2.f32 %v299_v63 }
 0x74e   :  { %v620_v1 = vpop.xlane.xlu0 %619 }
 0x74f   :  { %1898 = vlog2.f32 %v620_v1 }
 0x752   :  { %v942_v16 = vpop.xlane.xlu0 %941 }
 0x753   :  { %1900 = vlog2.f32 %v942_v16 }
 0x754   :  { %1902 = vpow2.f32 %v456_v34 }
 0x755   :  { %v1895_v7 = vpop.eup %1894  ;;  %1904 = vpow2.f32 %v778_v37 }
 0x756   :  { %v1897_v17 = vpop.eup %1896  ;;  %1263 = vadd.xlane.f32.xlu0 %v1895_v7  ;;  %1906 = vpow2.f32 %v1100_v43 }
 0x757   :  { %v301_v10 = vmul.f32 0.6931472, %v1897_v17 }
 0x759   :  { %v1899_v18 = vpop.eup %1898  ;;  %v302_v13 = vsub.f32 %v295_v21, %v301_v10 }
 0x75a   :  { %v622_v19 = vmul.f32 0.6931472, %v1899_v18 }
 0x75b   :  { %303 = vst [vmem:[#allocation11] sm:$0xff] %v302_v13 }
 0x75c   :  { %v623_v22 = vsub.f32 %v616_v33, %v622_v19 }
 0x75d   :  { %v1901_v23 = vpop.eup %1900 }
 0x75e   :  { %625 = vst [vmem:[#allocation11 + $0x10] sm:$0xff] %v623_v22  ;;  %v944_v28 = vmul.f32 0.6931472, %v1901_v23  ;;  %v1903_v40 = vpop.eup %1902 }
 0x75f   :  { %v1905_v49 = vpop.eup %1904 }
 0x760   :  { %v945_v29 = vsub.f32 %v938_v44, %v944_v28  ;;  %v1907_v52 = vpop.eup %1906 }
 0x762   :  { %947 = vst [vmem:[#allocation11 + $0x20] sm:$0xff] %v945_v29 }
 0x79b   :  { %v1412_v42 = vpop.f32.mrb[6].mxu1 }
 0x79c   :  { %v1417_v46 = vadd.f32 %v1412_v42, %v2280_v24  ;;  %v1414_v47 = vpop.f32.mrb[7].mxu1 }
 0x79d   :  { %v1418_v48 = vadd.f32 %v1414_v47, %v2282_v25 }
 0x79e   :  { %1435 = vst [vmem:[#allocation12] sm:$0xff] %v1417_v46 }
 0x79f   :  { %1419 = vmax.xlane.f32.xlu1 %v1418_v48 }
 0x7a3   :  { %458 = vadd.xlane.f32.xlu1 %v1903_v40 }
 0x7a7   :  { %780 = vadd.xlane.f32.xlu1 %v1905_v49 }
 0x7ab   :  { %1102 = vadd.xlane.f32.xlu1 %v1907_v52 }
 0x7e3   :  { %v1264_v53 = vpop.xlane.xlu0 %1263 }
 0x7e4   :  { %1908 = vlog2.f32 %v1264_v53 }
 0x7ee   :  { %v1909_v54 = vpop.eup %1908 }
 0x7ef   :  { %v1266_v55 = vmul.f32 0.6931472, %v1909_v54 }
 0x7f1   :  { %v1267_v56 = vsub.f32 %v1260_v58, %v1266_v55 }
 0x7f3   :  { %1269 = vst [vmem:[#allocation11 + $0x30] sm:$0xff] %v1267_v56 }
 0x82c   :  { %v1420_v59 = vpop.xlane.xlu1 %1419 }
 0x82d   :  { %v1421_v24 = vsub.f32 %v1418_v48, %v1420_v59 }
 0x82f   :  { %v1422_v60 = vmul.f32 1.442695, %v1421_v24 }
 0x830   :  { %v459_v61 = vpop.xlane.xlu1 %458 }
 0x831   :  { %1910 = vpow2.f32 %v1422_v60 }
 0x832   :  { %1912 = vlog2.f32 %v459_v61 }
 0x834   :  { %v781_v25 = vpop.xlane.xlu1 %780 }
 0x835   :  { %1914 = vlog2.f32 %v781_v25 }
 0x838   :  { %v1103_v62 = vpop.xlane.xlu1 %1102 }
 0x839   :  { %1916 = vlog2.f32 %v1103_v62 }
 0x83b   :  { %v1911_v4 = vpop.eup %1910 }
 0x83c   :  { %v1913_v8 = vpop.eup %1912  ;;  %1424 = vadd.xlane.f32.xlu1 %v1911_v4 }
 0x83d   :  { %v461_v9 = vmul.f32 0.6931472, %v1913_v8 }
 0x83f   :  { %v1915_v14 = vpop.eup %1914  ;;  %v462_v15 = vsub.f32 %v455_v30, %v461_v9 }
 0x840   :  { %v783_v20 = vmul.f32 0.6931472, %v1915_v14 }
 0x841   :  { %464 = vst [vmem:[#allocation11 + $0x8] sm:$0xff] %v462_v15 }
 0x842   :  { %v784_v21 = vsub.f32 %v777_v35, %v783_v20 }
 0x843   :  { %v1917_v26 = vpop.eup %1916 }
 0x844   :  { %786 = vst [vmem:[#allocation11 + $0x18] sm:$0xff] %v784_v21  ;;  %v1105_v27 = vmul.f32 0.6931472, %v1917_v26 }
 0x846   :  { %v1106_v32 = vsub.f32 %v1099_v41, %v1105_v27 }
 0x848   :  { %1108 = vst [vmem:[#allocation11 + $0x28] sm:$0xff] %v1106_v32 }
 0x849   :  { %2019 = shalt.err (!%p2016_p8)
}
 0x84a   :  { %s2020_s29 = scalar_lea.hbm %s2506_s6, 128 }
 0x84b   :  { %p2021_p9 = scmp.ne.s32.totalorder %s2506_s6, %s2020_s29  ;;  %p2024_p10 = scmp.lt.u32.totalorder %s2020_s29, %s2506_s6 }
 0x84d   :  { %p2026_p11 = pnand %p2024_p10, %p2021_p9 }
 0x84f   :  { %2029 = shalt.err (!%p2026_p11)
}
 0x850   :  { %1457 = dma.vmem_to_hbm [thread:$0]  %s1455_s25, 128, %s2506_s6, [#allocation13]  }
 0x851   :  { %s2072_s10 = smov [#allocation11]  }
 0x852   :  { %s1441_s11 = sshll.u32 %s2072_s10, 4  ;;  %s1442_s11 = int_to_ptr.vmem [resolvable:$true] %s1441_s11 }
 0x853   :  { %s2030_s12 = scalar_lea.vmem %s1442_s11, 1024  ;;  %p2035_p13 = scmp.lt.s32.totalorder %s1442_s11, %s1442_s11 }
 0x854   :  { %p2031_p12 = scmp.ne.s32.totalorder %s1442_s11, %s2030_s12  ;;  %p2036_p0 = scmp.lt.s32.totalorder %s2030_s12, %s2030_s12 }
 0x856   :  { %p2037_p1 = por %p2036_p0, %p2035_p13 }
 0x858   :  { %p2038_p2 = pnand %p2037_p1, %p2031_p12 }
 0x8c9   :  { %v1425_v33 = vpop.xlane.xlu1 %1424 }
 0x8ca   :  { %1918 = vlog2.f32 %v1425_v33 }
 0x8d4   :  { %v1919_v38 = vpop.eup %1918 }
 0x8d5   :  { %v1427_v39 = vmul.f32 0.6931472, %v1919_v38 }
 0x8d7   :  { %v1428_v44 = vsub.f32 %v1421_v24, %v1427_v39 }
 0x8d9   :  { %1430 = vst [vmem:[#allocation11 + $0x38] sm:$0xff] %v1428_v44 }
 0x8da   :  { %2041 = shalt.err (!%p2038_p2)
}
 0x8db   :  { %s2042_s6 = scalar_lea.hbm %s2505_s5, 1024 }
 0x8dc   :  { %p2043_p3 = scmp.ne.s32.totalorder %s2505_s5, %s2042_s6  ;;  %p2046_p4 = scmp.lt.u32.totalorder %s2042_s6, %s2505_s5 }
 0x8de   :  { %p2048_p5 = pnand %p2046_p4, %p2043_p3 }
 0x8e0   :  { %2051 = shalt.err (!%p2048_p5)
}
 0x8e1   :  { %1447 = dma.vmem_to_hbm [thread:$0]  %s1442_s11, 1024, %s2505_s5, [#allocation5], %s2064_s1, %s2064_s1, %s2065_s19  }
 0x8e2   :  { %2058 = dma.done.wait [#allocation5], 1024  }
 0x8e3   :  { %2059 = vsyncadd [#allocation5], 4294966272 }
 0x8e4   :  { %2060 = dma.done.wait [#allocation13], 128  }
 0x8e5   :  { %2061 = vsyncadd [#allocation13], 4294967168 }
 0x8e6   :  { %1464 = vsyncpa [#allocation4], 1 }
 0x8e7   :  { %1465 = vsyncpa [#allocation7], 1 }
 0x8e8   :  { %1466 = vsyncpa [#allocation10], 1 }
 0x8e9   :  { %1467 = vsyncpa [#allocation5], 1 }
 0x8ea   :  { %1468 = vsyncpa [#allocation13], 1 }

</bundles_post_ra>
